<compile_context>
chip_gen: v7x
topology: tpu7x:2x2x1
jax: 0.10.0
libtpu: 0.0.40
codegen_flags: <defaults>
</compile_context>

<pallas_src>
import math

import jax
import jax.numpy as jnp
from jax.experimental import pallas as pl
from jax.experimental.pallas import tpu as pltpu

# ----------------------------- model dims (small) ---------------------------
N_IMG = 4              # batch of images
IMG_C, IMG_H, IMG_W = 3, 16, 16
IMG_FLAT = IMG_C * IMG_H * IMG_W          # 768
CLIP_DIM = 256                            # stand-in for CLIP's 768
EMBED_DIM = 128                           # stand-in for GeoCLIP's 512
MLP_HID = 128
M_LOC = 8                                 # number of GPS locations
SIGMAS = (2.0 ** 0, 2.0 ** 4, 2.0 ** 8)   # rff sigmas, as in GeoCLIP
N_HEADS = len(SIGMAS)
RFF_HALF = 64                             # encoding size -> fourier dim 128
RFF_DIM = 2 * RFF_HALF
LOC_HID = 256

SUBLANE = 8

# ----------------------------- helpers --------------------------------------
def _vmem():
    return pl.BlockSpec(memory_space=pltpu.MemorySpace.VMEM)


def _smem():
    return pl.BlockSpec(memory_space=pltpu.MemorySpace.SMEM)


def _round_up(x, m):
    return ((x + m - 1) // m) * m


# ----------------------------- fused Pallas kernel --------------------------
def geoclip_fused_kernel(
    scale_ref,                           # SMEM (1,)   logit_scale (pre-exp)
    x_ref,                               # (NP, IMG_FLAT) bf16 flattened, zero-padded images
    lx_ref, ly_ref,                      # (MP, 1) f32 equal-earth x / y, zero-padded
    clip_w_ref, clip_b_ref,              # stand-in CLIP projection (bf16 w, f32 b)
    iw1_ref, ib1_ref, iw2_ref, ib2_ref,  # image-encoder MLP head
    bx_ref, by_ref,                      # (H, 1, RFF_HALF) f32: 2*pi*B columns per sigma
    w1_ref, b1_ref,                      # (H, RFF_DIM, LOC_HID) bf16, (H, 1, LOC_HID) f32
    w2_ref, b2_ref,                      # (H*LOC_HID, EMBED_DIM) bf16, (1, EMBED_DIM) f32
    li_ref,                              # out (NP, MP) f32  logits_per_image (padded)
):
    f32 = jnp.float32
    bf16 = jnp.bfloat16

    # ---- image encoder: CLIP projection + (Linear -> ReLU -> Linear) head ----
    x = x_ref[...]                                             # bf16
    clip_feat = (jnp.dot(x, clip_w_ref[...], preferred_element_type=f32)
                 + clip_b_ref[...])
    h = jnp.maximum(
        jnp.dot(clip_feat.astype(bf16), iw1_ref[...],
                preferred_element_type=f32) + ib1_ref[...],
        0.0)
    img_feat = (jnp.dot(h.astype(bf16), iw2_ref[...],
                        preferred_element_type=f32) + ib2_ref[...])

    # ---- location encoder: 3 RFF heads, fused second layer ----
    mp = lx_ref.shape[0]
    # hoist the lane-broadcast of lx/ly out of the unrolled head loop
    lxb = jnp.broadcast_to(lx_ref[...], (mp, RFF_HALF))        # f32
    lyb = jnp.broadcast_to(ly_ref[...], (mp, RFF_HALF))
    hh_list = []
    for i in range(N_HEADS):             # static unroll; all weights VMEM resident
        # gaussian encoding: vp = 2*pi * (loc @ B^T), K=2 done on the VPU (f32!)
        vp = lxb * bx_ref[i] + lyb * by_ref[i]                 # (MP, RFF_HALF)
        enc = jnp.concatenate([jnp.cos(vp), jnp.sin(vp)], axis=-1)  # (MP, RFF_DIM)
        hh = jnp.maximum(
            jnp.dot(enc.astype(bf16), w1_ref[i],
                    preferred_element_type=f32) + b1_ref[i],
            0.0)                                               # (MP, LOC_HID) f32
        hh_list.append(hh)
    hh_all = jnp.concatenate(hh_list, axis=-1)                 # (MP, 3*LOC_HID)
    # single K=768 dot: per-head sum happens inside the MXU accumulation
    loc_feat = (jnp.dot(hh_all.astype(bf16), w2_ref[...],
                        preferred_element_type=f32) + b2_ref[...])

    # ---- F.normalize(dim=1): x / max(||x||, 1e-12) == x * rsqrt(max(||x||^2, 1e-24))
    eps2 = 1e-24
    img_n = img_feat * jax.lax.rsqrt(
        jnp.maximum(jnp.sum(img_feat * img_feat, axis=1, keepdims=True), eps2))
    loc_n = loc_feat * jax.lax.rsqrt(
        jnp.maximum(jnp.sum(loc_feat * loc_feat, axis=1, keepdims=True), eps2))

    # ---- scaled similarity (single orientation; transpose is free outside) ----
    scale = jnp.exp(scale_ref[0])        # scalar exp, off the vector path
    li_ref[...] = scale * jax.lax.dot_general(
        img_n, loc_n, (((1,), (1,)), ((), ())), preferred_element_type=f32)


# ----------------------------- plain-JAX glue -------------------------------
def equal_earth_projection(L):
    # GeoCLIP's equal-earth projection of (lat, lon) degrees -> scaled (x, y).
    A1, A2, A3, A4 = 1.340264, -0.081106, 0.000893, 0.003796
    SF = 66.50336
    lat = jnp.radians(L[:, 0])
    lon = jnp.radians(L[:, 1])
    sin_theta = (jnp.sqrt(3.0) / 2.0) * jnp.sin(lat)
    theta = jnp.arcsin(sin_theta)
    denom = 3.0 * (9.0 * A4 * theta**8 + 7.0 * A3 * theta**6
                   + 3.0 * A2 * theta**2 + A1)
    x = (2.0 * jnp.sqrt(3.0) * lon * jnp.cos(theta)) / denom
    y = theta * (A4 * theta**8 + A3 * theta**6 + A2 * theta**2 + A1)
    return jnp.stack([x, y], axis=1) * SF / 180.0


# ----------------------------- parameters -----------------------------------
def init_params(key):
    ks = jax.random.split(key, 16)
    s = 0.02
    p = {}
    p["logit_scale"] = jnp.array([math.log(1.0 / 0.07)], dtype=jnp.float32)
    # stand-in CLIP backbone projection  (TODO(synk): real ViT not reproduced)
    p["clip_w"] = (s * jax.random.normal(ks[0], (IMG_FLAT, CLIP_DIM),
                                         jnp.float32)).astype(jnp.bfloat16)
    p["clip_b"] = jnp.zeros((1, CLIP_DIM), jnp.float32)
    # image-encoder MLP head: Linear -> ReLU -> Linear
    p["img_w1"] = (s * jax.random.normal(ks[1], (CLIP_DIM, MLP_HID),
                                         jnp.float32)).astype(jnp.bfloat16)
    p["img_b1"] = jnp.zeros((1, MLP_HID), jnp.float32)
    p["img_w2"] = (s * jax.random.normal(ks[2], (MLP_HID, EMBED_DIM),
                                         jnp.float32)).astype(jnp.bfloat16)
    p["img_b2"] = jnp.zeros((1, EMBED_DIM), jnp.float32)
    # location encoder: per-sigma random Fourier features + MLP head,
    # stacked & pre-packed for the fused kernel.
    Bs, w1s, w2s = [], [], []
    for i, sigma in enumerate(SIGMAS):
        B = sigma * jax.random.normal(ks[3 + i], (RFF_HALF, 2), jnp.float32)
        w1 = s * jax.random.normal(ks[6 + i], (RFF_DIM, LOC_HID), jnp.float32)
        w2_i = s * jax.random.normal(ks[9 + i], (LOC_HID, EMBED_DIM), jnp.float32)
        Bs.append(B)
        w1s.append(w1)
        w2s.append(w2_i)
    B = jnp.stack(Bs)                                    # (H, RFF_HALF, 2)
    # pre-fold the 2*pi of the gaussian encoding into B's columns (keep f32!)
    p["loc_bx"] = (2.0 * jnp.pi) * B[:, :, 0][:, None, :]   # (H, 1, RFF_HALF)
    p["loc_by"] = (2.0 * jnp.pi) * B[:, :, 1][:, None, :]   # (H, 1, RFF_HALF)
    p["loc_w1"] = jnp.stack(w1s).astype(jnp.bfloat16)    # (H, RFF_DIM, LOC_HID)
    p["loc_b1"] = jnp.zeros((N_HEADS, 1, LOC_HID), jnp.float32)
    # fused second layer: stack along K so one K=768 dot sums the three heads
    p["loc_w2"] = jnp.concatenate(w2s, axis=0).astype(jnp.bfloat16)  # (H*LOC_HID, EMBED)
    p["loc_b2"] = jnp.zeros((1, EMBED_DIM), jnp.float32)  # sum of per-head biases
    return p


# ----------------------------- forward pass ---------------------------------
def geoclip_forward(params, image, location):
    """image: (n, 3, H, W) NCHW float32; location: (m, 2) float32 (lat, lon)."""
    n = image.shape[0]
    m = location.shape[0]
    # sublane-pad both sample axes (8); padded rows are sliced off on return.
    np_ = _round_up(max(n, SUBLANE), SUBLANE)
    mp_ = _round_up(max(m, SUBLANE), SUBLANE)

    x = image.reshape(n, -1).astype(jnp.bfloat16)          # (n, 3*H*W) MXU operand
    x = jnp.pad(x, ((0, np_ - n), (0, 0)))

    loc_proj = equal_earth_projection(location)            # tiny (m, 2), f32
    loc_proj = jnp.pad(loc_proj, ((0, mp_ - m), (0, 0)))
    lx = loc_proj[:, 0:1]                                   # (MP, 1)
    ly = loc_proj[:, 1:2]                                   # (MP, 1)

    li_pad = pl.pallas_call(
        geoclip_fused_kernel,
        out_shape=jax.ShapeDtypeStruct((np_, mp_), jnp.float32),
        in_specs=[_smem()] + [_vmem()] * 15,
        out_specs=_vmem(),
    )(params["logit_scale"], x, lx, ly,
      params["clip_w"], params["clip_b"],
      params["img_w1"], params["img_b1"], params["img_w2"], params["img_b2"],
      params["loc_bx"], params["loc_by"],
      params["loc_w1"], params["loc_b1"],
      params["loc_w2"], params["loc_b2"])

    logits_per_image = li_pad[:n, :m]
    logits_per_location = logits_per_image.T   # exact identity, fuses with slice
    return logits_per_image, logits_per_location


# ----------------------------- main -----------------------------------------
if __name__ == "__main__":
    key = jax.random.PRNGKey(0)
    k_img, k_loc, k_par = jax.random.split(key, 3)

    image = jax.random.normal(k_img, (N_IMG, IMG_C, IMG_H, IMG_W), jnp.float32)
    # GPS coordinates: lat in [-90, 90], lon in [-180, 180]
    u = jax.random.uniform(k_loc, (M_LOC, 2), jnp.float32)
    location = jnp.stack([u[:, 0] * 180.0 - 90.0, u[:, 1] * 360.0 - 180.0], axis=1)

    params = init_params(k_par)

    fwd = jax.jit(geoclip_forward)
    logits_per_image, logits_per_location = fwd(params, image, location)
    jax.block_until_ready((logits_per_image, logits_per_location))

    assert logits_per_image.shape == (N_IMG, M_LOC)
    assert logits_per_location.shape == (M_LOC, N_IMG)
    assert jnp.all(jnp.isfinite(logits_per_image))
    assert jnp.all(jnp.isfinite(logits_per_location))
    # logits_per_location is now derived as the exact transpose
    assert jnp.array_equal(logits_per_location, logits_per_image.T)
    print("KERNEL_OK")
</pallas_src>

<mosaic_0001>
module attributes {stable_mosaic.version = 11 : i64} {
  func.func @geoclip_fused_kernel(%arg0: memref<1xf32, #tpu.memory_space<smem>>, %arg1: memref<8x768xbf16, #tpu.memory_space<vmem>>, %arg2: memref<8x1xf32, #tpu.memory_space<vmem>>, %arg3: memref<8x1xf32, #tpu.memory_space<vmem>>, %arg4: memref<768x256xbf16, #tpu.memory_space<vmem>>, %arg5: memref<1x256xf32, #tpu.memory_space<vmem>>, %arg6: memref<256x128xbf16, #tpu.memory_space<vmem>>, %arg7: memref<1x128xf32, #tpu.memory_space<vmem>>, %arg8: memref<128x128xbf16, #tpu.memory_space<vmem>>, %arg9: memref<1x128xf32, #tpu.memory_space<vmem>>, %arg10: memref<3x1x64xf32, #tpu.memory_space<vmem>>, %arg11: memref<3x1x64xf32, #tpu.memory_space<vmem>>, %arg12: memref<3x128x256xbf16, #tpu.memory_space<vmem>>, %arg13: memref<3x1x256xf32, #tpu.memory_space<vmem>>, %arg14: memref<768x128xbf16, #tpu.memory_space<vmem>>, %arg15: memref<1x128xf32, #tpu.memory_space<vmem>>, %arg16: memref<8x8xf32, #tpu.memory_space<vmem>>) attributes {dimension_semantics = [], scalar_prefetch = 0 : i64, scratch_operands = 0 : i64, tpu.core_type = #tpu.core_type<tc>} {
    %c0 = arith.constant 0 : index
    %c0_0 = arith.constant 0 : index
    %0 = vector.load %arg1[%c0, %c0_0] : memref<8x768xbf16, #tpu.memory_space<vmem>>, vector<8x768xbf16>
    %c0_1 = arith.constant 0 : index
    %c0_2 = arith.constant 0 : index
    %1 = vector.load %arg4[%c0_1, %c0_2] : memref<768x256xbf16, #tpu.memory_space<vmem>>, vector<768x256xbf16>
    %cst = arith.constant dense<0.000000e+00> : vector<8x256xf32>
    %2 = tpu.matmul %0, %1, %cst {dimension_numbers = #tpu.dot_dimension_numbers<[1], [0], [0], [1], [0, 0, 1, 1], [], []>} : vector<8x768xbf16>, vector<768x256xbf16>, vector<8x256xf32> -> vector<8x256xf32>
    %c0_3 = arith.constant 0 : index
    %c0_4 = arith.constant 0 : index
    %3 = vector.load %arg5[%c0_3, %c0_4] : memref<1x256xf32, #tpu.memory_space<vmem>>, vector<1x256xf32>
    %4 = vector.broadcast %3 : vector<1x256xf32> to vector<8x256xf32>
    %5 = arith.addf %2, %4 : vector<8x256xf32>
    %6 = arith.truncf %5 : vector<8x256xf32> to vector<8x256xbf16>
    %c0_5 = arith.constant 0 : index
    %c0_6 = arith.constant 0 : index
    %7 = vector.load %arg6[%c0_5, %c0_6] : memref<256x128xbf16, #tpu.memory_space<vmem>>, vector<256x128xbf16>
    %cst_7 = arith.constant dense<0.000000e+00> : vector<8x128xf32>
    %8 = tpu.matmul %6, %7, %cst_7 {dimension_numbers = #tpu.dot_dimension_numbers<[1], [0], [0], [1], [0, 0, 1, 1], [], []>} : vector<8x256xbf16>, vector<256x128xbf16>, vector<8x128xf32> -> vector<8x128xf32>
    %c0_8 = arith.constant 0 : index
    %c0_9 = arith.constant 0 : index
    %9 = vector.load %arg7[%c0_8, %c0_9] : memref<1x128xf32, #tpu.memory_space<vmem>>, vector<1x128xf32>
    %10 = vector.broadcast %9 : vector<1x128xf32> to vector<8x128xf32>
    %11 = arith.addf %8, %10 : vector<8x128xf32>
    %cst_10 = arith.constant 0.000000e+00 : f32
    %12 = vector.broadcast %cst_10 : f32 to vector<8x128xf32>
    %13 = arith.maximumf %11, %12 : vector<8x128xf32>
    %14 = arith.truncf %13 : vector<8x128xf32> to vector<8x128xbf16>
    %c0_11 = arith.constant 0 : index
    %c0_12 = arith.constant 0 : index
    %15 = vector.load %arg8[%c0_11, %c0_12] : memref<128x128xbf16, #tpu.memory_space<vmem>>, vector<128x128xbf16>
    %cst_13 = arith.constant dense<0.000000e+00> : vector<8x128xf32>
    %16 = tpu.matmul %14, %15, %cst_13 {dimension_numbers = #tpu.dot_dimension_numbers<[1], [0], [0], [1], [0, 0, 1, 1], [], []>} : vector<8x128xbf16>, vector<128x128xbf16>, vector<8x128xf32> -> vector<8x128xf32>
    %c0_14 = arith.constant 0 : index
    %c0_15 = arith.constant 0 : index
    %17 = vector.load %arg9[%c0_14, %c0_15] : memref<1x128xf32, #tpu.memory_space<vmem>>, vector<1x128xf32>
    %18 = vector.broadcast %17 : vector<1x128xf32> to vector<8x128xf32>
    %19 = arith.addf %16, %18 : vector<8x128xf32>
    %c0_16 = arith.constant 0 : index
    %c0_17 = arith.constant 0 : index
    %20 = vector.load %arg2[%c0_16, %c0_17] : memref<8x1xf32, #tpu.memory_space<vmem>>, vector<8x1xf32>
    %21 = vector.shape_cast %20 : vector<8x1xf32> to vector<8x1xf32>
    %22 = vector.broadcast %21 : vector<8x1xf32> to vector<8x64xf32>
    %c0_18 = arith.constant 0 : index
    %c0_19 = arith.constant 0 : index
    %23 = vector.load %arg3[%c0_18, %c0_19] : memref<8x1xf32, #tpu.memory_space<vmem>>, vector<8x1xf32>
    %24 = vector.shape_cast %23 : vector<8x1xf32> to vector<8x1xf32>
    %25 = vector.broadcast %24 : vector<8x1xf32> to vector<8x64xf32>
    %c0_20 = arith.constant 0 : index
    %c0_21 = arith.constant 0 : index
    %c0_22 = arith.constant 0 : index
    %26 = vector.load %arg10[%c0_20, %c0_21, %c0_22] : memref<3x1x64xf32, #tpu.memory_space<vmem>>, vector<1x1x64xf32>
    %27 = vector.shape_cast %26 : vector<1x1x64xf32> to vector<1x64xf32>
    %28 = vector.broadcast %27 : vector<1x64xf32> to vector<8x64xf32>
    %29 = arith.mulf %22, %28 : vector<8x64xf32>
    %c0_23 = arith.constant 0 : index
    %c0_24 = arith.constant 0 : index
    %c0_25 = arith.constant 0 : index
    %30 = vector.load %arg11[%c0_23, %c0_24, %c0_25] : memref<3x1x64xf32, #tpu.memory_space<vmem>>, vector<1x1x64xf32>
    %31 = vector.shape_cast %30 : vector<1x1x64xf32> to vector<1x64xf32>
    %32 = vector.broadcast %31 : vector<1x64xf32> to vector<8x64xf32>
    %33 = arith.mulf %25, %32 : vector<8x64xf32>
    %34 = arith.addf %29, %33 : vector<8x64xf32>
    %35 = math.cos %34 : vector<8x64xf32>
    %36 = math.sin %34 : vector<8x64xf32>
    %37 = tpu.concatenate %35, %36 in 1 : vector<8x64xf32>, vector<8x64xf32> -> vector<8x128xf32>
    %38 = arith.truncf %37 : vector<8x128xf32> to vector<8x128xbf16>
    %c0_26 = arith.constant 0 : index
    %c0_27 = arith.constant 0 : index
    %c0_28 = arith.constant 0 : index
    %39 = vector.load %arg12[%c0_26, %c0_27, %c0_28] : memref<3x128x256xbf16, #tpu.memory_space<vmem>>, vector<1x128x256xbf16>
    %40 = vector.shape_cast %39 : vector<1x128x256xbf16> to vector<128x256xbf16>
    %cst_29 = arith.constant dense<0.000000e+00> : vector<8x256xf32>
    %41 = tpu.matmul %38, %40, %cst_29 {dimension_numbers = #tpu.dot_dimension_numbers<[1], [0], [0], [1], [0, 0, 1, 1], [], []>} : vector<8x128xbf16>, vector<128x256xbf16>, vector<8x256xf32> -> vector<8x256xf32>
    %c0_30 = arith.constant 0 : index
    %c0_31 = arith.constant 0 : index
    %c0_32 = arith.constant 0 : index
    %42 = vector.load %arg13[%c0_30, %c0_31, %c0_32] : memref<3x1x256xf32, #tpu.memory_space<vmem>>, vector<1x1x256xf32>
    %43 = vector.shape_cast %42 : vector<1x1x256xf32> to vector<1x256xf32>
    %44 = vector.broadcast %43 : vector<1x256xf32> to vector<8x256xf32>
    %45 = arith.addf %41, %44 : vector<8x256xf32>
    %cst_33 = arith.constant 0.000000e+00 : f32
    %46 = vector.broadcast %cst_33 : f32 to vector<8x256xf32>
    %47 = arith.maximumf %45, %46 : vector<8x256xf32>
    %c1 = arith.constant 1 : index
    %c0_34 = arith.constant 0 : index
    %c0_35 = arith.constant 0 : index
    %48 = vector.load %arg10[%c1, %c0_34, %c0_35] : memref<3x1x64xf32, #tpu.memory_space<vmem>>, vector<1x1x64xf32>
    %49 = vector.shape_cast %48 : vector<1x1x64xf32> to vector<1x64xf32>
    %50 = vector.broadcast %49 : vector<1x64xf32> to vector<8x64xf32>
    %51 = arith.mulf %22, %50 : vector<8x64xf32>
    %c1_36 = arith.constant 1 : index
    %c0_37 = arith.constant 0 : index
    %c0_38 = arith.constant 0 : index
    %52 = vector.load %arg11[%c1_36, %c0_37, %c0_38] : memref<3x1x64xf32, #tpu.memory_space<vmem>>, vector<1x1x64xf32>
    %53 = vector.shape_cast %52 : vector<1x1x64xf32> to vector<1x64xf32>
    %54 = vector.broadcast %53 : vector<1x64xf32> to vector<8x64xf32>
    %55 = arith.mulf %25, %54 : vector<8x64xf32>
    %56 = arith.addf %51, %55 : vector<8x64xf32>
    %57 = math.cos %56 : vector<8x64xf32>
    %58 = math.sin %56 : vector<8x64xf32>
    %59 = tpu.concatenate %57, %58 in 1 : vector<8x64xf32>, vector<8x64xf32> -> vector<8x128xf32>
    %60 = arith.truncf %59 : vector<8x128xf32> to vector<8x128xbf16>
    %c1_39 = arith.constant 1 : index
    %c0_40 = arith.constant 0 : index
    %c0_41 = arith.constant 0 : index
    %61 = vector.load %arg12[%c1_39, %c0_40, %c0_41] : memref<3x128x256xbf16, #tpu.memory_space<vmem>>, vector<1x128x256xbf16>
    %62 = vector.shape_cast %61 : vector<1x128x256xbf16> to vector<128x256xbf16>
    %cst_42 = arith.constant dense<0.000000e+00> : vector<8x256xf32>
    %63 = tpu.matmul %60, %62, %cst_42 {dimension_numbers = #tpu.dot_dimension_numbers<[1], [0], [0], [1], [0, 0, 1, 1], [], []>} : vector<8x128xbf16>, vector<128x256xbf16>, vector<8x256xf32> -> vector<8x256xf32>
    %c1_43 = arith.constant 1 : index
    %c0_44 = arith.constant 0 : index
    %c0_45 = arith.constant 0 : index
    %64 = vector.load %arg13[%c1_43, %c0_44, %c0_45] : memref<3x1x256xf32, #tpu.memory_space<vmem>>, vector<1x1x256xf32>
    %65 = vector.shape_cast %64 : vector<1x1x256xf32> to vector<1x256xf32>
    %66 = vector.broadcast %65 : vector<1x256xf32> to vector<8x256xf32>
    %67 = arith.addf %63, %66 : vector<8x256xf32>
    %cst_46 = arith.constant 0.000000e+00 : f32
    %68 = vector.broadcast %cst_46 : f32 to vector<8x256xf32>
    %69 = arith.maximumf %67, %68 : vector<8x256xf32>
    %c2 = arith.constant 2 : index
    %c0_47 = arith.constant 0 : index
    %c0_48 = arith.constant 0 : index
    %70 = vector.load %arg10[%c2, %c0_47, %c0_48] : memref<3x1x64xf32, #tpu.memory_space<vmem>>, vector<1x1x64xf32>
    %71 = vector.shape_cast %70 : vector<1x1x64xf32> to vector<1x64xf32>
    %72 = vector.broadcast %71 : vector<1x64xf32> to vector<8x64xf32>
    %73 = arith.mulf %22, %72 : vector<8x64xf32>
    %c2_49 = arith.constant 2 : index
    %c0_50 = arith.constant 0 : index
    %c0_51 = arith.constant 0 : index
    %74 = vector.load %arg11[%c2_49, %c0_50, %c0_51] : memref<3x1x64xf32, #tpu.memory_space<vmem>>, vector<1x1x64xf32>
    %75 = vector.shape_cast %74 : vector<1x1x64xf32> to vector<1x64xf32>
    %76 = vector.broadcast %75 : vector<1x64xf32> to vector<8x64xf32>
    %77 = arith.mulf %25, %76 : vector<8x64xf32>
    %78 = arith.addf %73, %77 : vector<8x64xf32>
    %79 = math.cos %78 : vector<8x64xf32>
    %80 = math.sin %78 : vector<8x64xf32>
    %81 = tpu.concatenate %79, %80 in 1 : vector<8x64xf32>, vector<8x64xf32> -> vector<8x128xf32>
    %82 = arith.truncf %81 : vector<8x128xf32> to vector<8x128xbf16>
    %c2_52 = arith.constant 2 : index
    %c0_53 = arith.constant 0 : index
    %c0_54 = arith.constant 0 : index
    %83 = vector.load %arg12[%c2_52, %c0_53, %c0_54] : memref<3x128x256xbf16, #tpu.memory_space<vmem>>, vector<1x128x256xbf16>
    %84 = vector.shape_cast %83 : vector<1x128x256xbf16> to vector<128x256xbf16>
    %cst_55 = arith.constant dense<0.000000e+00> : vector<8x256xf32>
    %85 = tpu.matmul %82, %84, %cst_55 {dimension_numbers = #tpu.dot_dimension_numbers<[1], [0], [0], [1], [0, 0, 1, 1], [], []>} : vector<8x128xbf16>, vector<128x256xbf16>, vector<8x256xf32> -> vector<8x256xf32>
    %c2_56 = arith.constant 2 : index
    %c0_57 = arith.constant 0 : index
    %c0_58 = arith.constant 0 : index
    %86 = vector.load %arg13[%c2_56, %c0_57, %c0_58] : memref<3x1x256xf32, #tpu.memory_space<vmem>>, vector<1x1x256xf32>
    %87 = vector.shape_cast %86 : vector<1x1x256xf32> to vector<1x256xf32>
    %88 = vector.broadcast %87 : vector<1x256xf32> to vector<8x256xf32>
    %89 = arith.addf %85, %88 : vector<8x256xf32>
    %cst_59 = arith.constant 0.000000e+00 : f32
    %90 = vector.broadcast %cst_59 : f32 to vector<8x256xf32>
    %91 = arith.maximumf %89, %90 : vector<8x256xf32>
    %92 = tpu.concatenate %47, %69, %91 in 1 : vector<8x256xf32>, vector<8x256xf32>, vector<8x256xf32> -> vector<8x768xf32>
    %93 = arith.truncf %92 : vector<8x768xf32> to vector<8x768xbf16>
    %c0_60 = arith.constant 0 : index
    %c0_61 = arith.constant 0 : index
    %94 = vector.load %arg14[%c0_60, %c0_61] : memref<768x128xbf16, #tpu.memory_space<vmem>>, vector<768x128xbf16>
    %cst_62 = arith.constant dense<0.000000e+00> : vector<8x128xf32>
    %95 = tpu.matmul %93, %94, %cst_62 {dimension_numbers = #tpu.dot_dimension_numbers<[1], [0], [0], [1], [0, 0, 1, 1], [], []>} : vector<8x768xbf16>, vector<768x128xbf16>, vector<8x128xf32> -> vector<8x128xf32>
    %c0_63 = arith.constant 0 : index
    %c0_64 = arith.constant 0 : index
    %96 = vector.load %arg15[%c0_63, %c0_64] : memref<1x128xf32, #tpu.memory_space<vmem>>, vector<1x128xf32>
    %97 = vector.broadcast %96 : vector<1x128xf32> to vector<8x128xf32>
    %98 = arith.addf %95, %97 : vector<8x128xf32>
    %99 = arith.mulf %19, %19 : vector<8x128xf32>
    %cst_65 = arith.constant dense<0.000000e+00> : vector<8xf32>
    %100 = vector.multi_reduction <add>, %99, %cst_65 [1] : vector<8x128xf32> to vector<8xf32>
    %101 = vector.shape_cast %100 : vector<8xf32> to vector<8x1xf32>
    %cst_66 = arith.constant 1.000000e-24 : f32
    %102 = vector.broadcast %cst_66 : f32 to vector<8x1xf32>
    %103 = arith.maximumf %101, %102 : vector<8x1xf32>
    %104 = math.rsqrt %103 : vector<8x1xf32>
    %105 = vector.broadcast %104 : vector<8x1xf32> to vector<8x128xf32>
    %106 = arith.mulf %19, %105 : vector<8x128xf32>
    %107 = arith.mulf %98, %98 : vector<8x128xf32>
    %cst_67 = arith.constant dense<0.000000e+00> : vector<8xf32>
    %108 = vector.multi_reduction <add>, %107, %cst_67 [1] : vector<8x128xf32> to vector<8xf32>
    %109 = vector.shape_cast %108 : vector<8xf32> to vector<8x1xf32>
    %cst_68 = arith.constant 1.000000e-24 : f32
    %110 = vector.broadcast %cst_68 : f32 to vector<8x1xf32>
    %111 = arith.maximumf %109, %110 : vector<8x1xf32>
    %112 = math.rsqrt %111 : vector<8x1xf32>
    %113 = vector.broadcast %112 : vector<8x1xf32> to vector<8x128xf32>
    %114 = arith.mulf %98, %113 : vector<8x128xf32>
    %c0_69 = arith.constant 0 : index
    %115 = memref.load %arg0[%c0_69] : memref<1xf32, #tpu.memory_space<smem>>
    %116 = math.exp %115 : f32
    %cst_70 = arith.constant dense<0.000000e+00> : vector<8x8xf32>
    %117 = tpu.matmul %106, %114, %cst_70 {dimension_numbers = #tpu.dot_dimension_numbers<[1], [1], [0], [0], [0, 0, 1, 0], [], []>} : vector<8x128xf32>, vector<8x128xf32>, vector<8x8xf32> -> vector<8x8xf32>
    %118 = vector.broadcast %116 : f32 to vector<8x8xf32>
    %119 = arith.mulf %118, %117 : vector<8x8xf32>
    %c0_71 = arith.constant 0 : index
    %c0_72 = arith.constant 0 : index
    %120 = vector.load %arg16[%c0_71, %c0_72] : memref<8x8xf32, #tpu.memory_space<vmem>>, vector<8x8xf32>
    tpu.vector_store %arg16[%c0_71, %c0_72], %119 {strides = array<i32>} : memref<8x8xf32, #tpu.memory_space<vmem>>, vector<8x8xf32>,
    return
  }
}

</mosaic_0001>

<bundles_post_ra>
// kernel: geoclip_forward.1
= control target key start
LH: loop header
LB: loop body
LE: loop exit
PB: predicated region body
PF: predicated region fallthrough
CT: control target
= control target key end

     0   :  { %s4388_s0 = inlined_call_operand.<no memory space> [shape: f32[1], index: 0, kind: input, shape index: {}]   ;;  %s4389_s1 = inlined_call_operand.vmem [shape: bf16[8,768], index: 1, kind: input, shape index: {}]   ;;  %s4390_s2 = inlined_call_operand.vmem [shape: f32[8,1], index: 2, kind: input, shape index: {}]   ;;  %s4391_s3 = inlined_call_operand.vmem [shape: f32[8,1], index: 3, kind: input, shape index: {}]   ;;  %s4392_s4 = inlined_call_operand.hbm [shape: bf16[768,256], index: 4, kind: input, shape index: {}]   ;;  %s4393_s5 = inlined_call_operand.vmem [shape: f32[1,256], index: 5, kind: input, shape index: {}]   ;;  %s4394_s6 = inlined_call_operand.vmem [shape: bf16[256,128], index: 6, kind: input, shape index: {}]   ;;  %s4395_s7 = inlined_call_operand.vmem [shape: f32[1,128], index: 7, kind: input, shape index: {}]   ;;  %s4396_s8 = inlined_call_operand.hbm [shape: bf16[128,128], index: 8, kind: input, shape index: {}]   ;;  %s4397_s9 = inlined_call_operand.vmem [shape: f32[1,128], index: 9, kind: input, shape index: {}]   ;;  %s4398_s10 = inlined_call_operand.vmem [shape: f32[3,1,64], index: 10, kind: input, shape index: {}]   ;;  %s4399_s11 = inlined_call_operand.vmem [shape: f32[3,1,64], index: 11, kind: input, shape index: {}]   ;;  %s4400_s12 = inlined_call_operand.vmem [shape: bf16[3,128,256], index: 12, kind: input, shape index: {}]   ;;  %s4401_s13 = inlined_call_operand.vmem [shape: f32[3,1,256], index: 13, kind: input, shape index: {}]   ;;  %s4402_s14 = inlined_call_operand.hbm [shape: bf16[768,128], index: 14, kind: input, shape index: {}]   ;;  %s4403_s15 = inlined_call_operand.vmem [shape: f32[1,128], index: 15, kind: input, shape index: {}]   ;;  %s4404_s16 = inlined_call_operand.vmem [shape: f32[8,8], index: 16, kind: output, shape index: {}]  }
   0x1   :  { %4407 = sst [smem:[#allocation10_spill]] %s4388_s0 }
   0x2   :  { %22 = vsyncpa [#allocation4], 0 }
   0x3   :  { %23 = vsyncpa [#allocation6], 0  ;;  %s3739_s21 = smov [#allocation5]   ;;  %s3669_s25 = scalar_lea.hbm %s4396_s8, 1024 }
   0x4   :  { %s55_s22 = sshll.u32 %s3739_s21, 4  ;;  %p3670_p0 = scmp.ne.s32.totalorder %s4396_s8, %s3669_s25  ;;  %s56_s22 = int_to_ptr.vmem [resolvable:$true] %s55_s22 }
   0x5   :  { %p3673_p1 = scmp.lt.u32.totalorder %s3669_s25, %s4396_s8 }
   0x7   :  { %p3675_p2 = pnand %p3673_p1, %p3670_p0 }
   0x9   :  { %3678 = shalt.err (!%p3675_p2)
}
   0xa   :  { %s3679_s30 = scalar_lea.vmem %s56_s22, 1024  ;;  %p3684_p4 = scmp.lt.s32.totalorder %s56_s22, %s56_s22 }
   0xb   :  { %p3680_p3 = scmp.ne.s32.totalorder %s56_s22, %s3679_s30  ;;  %p3685_p5 = scmp.lt.s32.totalorder %s3679_s30, %s3679_s30 }
   0xd   :  { %p3686_p6 = por %p3685_p5, %p3684_p4 }
   0xf   :  { %p3687_p7 = pnand %p3686_p6, %p3680_p3 }
  0x11   :  { %3690 = shalt.err (!%p3687_p7)
}
  0x12   :  { %s4405_s0 = smov 64   ;;  %s3741_s17 = smov 4  }
  0x13   :  { %61 = dma.hbm_to_vmem [thread:$0]  %s4396_s8, 1024, %s56_s22, [#allocation6], %s4405_s0, %s4405_s0, %s3741_s17  }
  0x14   :  { %s3742_s20 = smov [#allocation3]   ;;  %s3691_s25 = scalar_lea.hbm %s4392_s4, 12288 }
  0x15   :  { %s37_s21 = sshll.u32 %s3742_s20, 4  ;;  %p3692_p8 = scmp.ne.s32.totalorder %s4392_s4, %s3691_s25  ;;  %s38_s21 = int_to_ptr.vmem [resolvable:$true] %s37_s21 }
  0x16   :  { %p3695_p9 = scmp.lt.u32.totalorder %s3691_s25, %s4392_s4 }
  0x18   :  { %p3697_p10 = pnand %p3695_p9, %p3692_p8 }
  0x1a   :  { %3700 = shalt.err (!%p3697_p10)
}
  0x1b   :  { %s3701_s30 = scalar_lea.vmem %s38_s21, 12288  ;;  %p3706_p12 = scmp.lt.s32.totalorder %s38_s21, %s38_s21 }
  0x1c   :  { %p3702_p11 = scmp.ne.s32.totalorder %s38_s21, %s3701_s30  ;;  %p3707_p13 = scmp.lt.s32.totalorder %s3701_s30, %s3701_s30 }
  0x1e   :  { %p3708_p0 = por %p3707_p13, %p3706_p12 }
  0x20   :  { %p3709_p1 = pnand %p3708_p0, %p3702_p11 }
  0x22   :  { %3712 = shalt.err (!%p3709_p1)
}
  0x23   :  { %s3743_s8 = smov 128   ;;  %s3744_s22 = smov 8  }
  0x24   :  { %43 = dma.hbm_to_vmem [thread:$0]  %s4392_s4, 12288, %s38_s21, [#allocation4], %s3743_s8, %s3743_s8, %s3744_s22  }
  0x25   :  { %s3745_s20 = smov [#allocation7]   ;;  %s3713_s26 = scalar_lea.hbm %s4402_s14, 6144 }
  0x26   :  { %s77_s23 = sshll.u32 %s3745_s20, 4  ;;  %p3714_p2 = scmp.ne.s32.totalorder %s4402_s14, %s3713_s26  ;;  %s78_s23 = int_to_ptr.vmem [resolvable:$true] %s77_s23 }
  0x27   :  { %p3717_p3 = scmp.lt.u32.totalorder %s3713_s26, %s4402_s14 }
  0x29   :  { %p3719_p4 = pnand %p3717_p3, %p3714_p2 }
  0x2b   :  { %3722 = shalt.err (!%p3719_p4)
}
  0x2c   :  { %s3723_s0 = scalar_lea.vmem %s78_s23, 6144  ;;  %p3728_p6 = scmp.lt.s32.totalorder %s78_s23, %s78_s23 }
  0x2d   :  { %p3724_p5 = scmp.ne.s32.totalorder %s78_s23, %s3723_s0  ;;  %p3729_p7 = scmp.lt.s32.totalorder %s3723_s0, %s3723_s0 }
  0x2f   :  { %p3730_p8 = por %p3729_p7, %p3728_p6 }
  0x31   :  { %p3731_p9 = pnand %p3730_p8, %p3724_p5 }
  0x33   :  { %3734 = shalt.err (!%p3731_p9)
}
  0x34   :  { %s4408_s4 = smov 64  }
  0x35   :  { %83 = dma.hbm_to_vmem [thread:$0]  %s4402_s14, 6144, %s78_s23, [#allocation6], %s4408_s4, %s4408_s4, %s3741_s17  }
  0x36   :  { %3735 = dma.done.wait [#allocation4], 12288  }
  0x37   :  { %3736 = vsyncadd [#allocation4], 4294955008 }
  0x38   :  { %3737 = dma.done.wait [#allocation6], 7168  }
  0x39   :  { %3738 = vsyncadd [#allocation6], 4294960128  ;;  %v3357_v0 = vld [vmem:[#allocation3 + $0x4] ss:$8 sps:$4 sm:$0xff]   ;;  %v3746_v1 = vmov 0  }
  0x3a   :  { %3356 = vset.pattern.permute.xlu0 %v3746_v1  ;;  %v3359_v2 = vld [vmem:[#allocation3] ss:$8 sps:$4 sm:$0xff]   ;;  %708 = vmatprep.subr.bf16.mxu0 %v3357_v0  ;;  %v3360_v3 = vld [vmem:[#allocation3 + $0x14] ss:$8 sps:$4 sm:$0xff]   ;;  %v3362_v4 = vld [vmem:[#allocation3 + $0x10] ss:$8 sps:$4 sm:$0xff]  }
  0x3b   :  { %709 = vmatpush1.bf16.msra.mxu0 %v3359_v2  ;;  %v3363_v5 = vld [vmem:[#allocation3 + $0x24] ss:$8 sps:$4 sm:$0xff]   ;;  %v3365_v6 = vld [vmem:[#allocation3 + $0x20] ss:$8 sps:$4 sm:$0xff]   ;;  %v3366_v7 = vld [vmem:[#allocation3 + $0x34] ss:$8 sps:$4 sm:$0xff]  }
  0x3c   :  { %710 = vmatprep.subr.bf16.mxu0 %v3360_v3  ;;  %v3368_v8 = vld [vmem:[#allocation3 + $0x30] ss:$8 sps:$4 sm:$0xff]   ;;  %v3369_v9 = vld [vmem:[#allocation3 + $0x44] ss:$8 sps:$4 sm:$0xff]   ;;  %v3371_v10 = vld [vmem:[#allocation3 + $0x40] ss:$8 sps:$4 sm:$0xff]  }
  0x3d   :  { %v3372_v11 = vld [vmem:[#allocation3 + $0x54] ss:$8 sps:$4 sm:$0xff]   ;;  %v3374_v12 = vld [vmem:[#allocation3 + $0x50] ss:$8 sps:$4 sm:$0xff]   ;;  %v3375_v13 = vld [vmem:[#allocation3 + $0x64] ss:$8 sps:$4 sm:$0xff]  }
  0x3e   :  { %v96_v14 = vld [vmem:[%s4389_s1] sm:$0xff]  ;;  %v3378_v17 = vld [vmem:[#allocation3 + $0x74] ss:$8 sps:$4 sm:$0xff]   ;;  %v3380_v18 = vld [vmem:[#allocation3 + $0x70] ss:$8 sps:$4 sm:$0xff]  }
  0x3f   :  { %711 = vmatpush1.bf16.msra.mxu0 %v3362_v4  ;;  %v2900_v15 = vcombine.high %v96_v14, %v96_v14  ;;  %v3377_v16 = vld [vmem:[#allocation3 + $0x60] ss:$8 sps:$4 sm:$0xff]   ;;  %v3381_v19 = vld [vmem:[#allocation3 + $0x84] ss:$8 sps:$4 sm:$0xff]   ;;  %v3384_v21 = vld [vmem:[#allocation3 + $0x94] ss:$8 sps:$4 sm:$0xff]   ;;  %v2899_v39 = vcombine.low %v96_v14, %v96_v14 }
  0x40   :  { %712 = vmatprep.subr.bf16.mxu0 %v3363_v5  ;;  %v3383_v20 = vld [vmem:[#allocation3 + $0x80] ss:$8 sps:$4 sm:$0xff]   ;;  %v3386_v22 = vld [vmem:[#allocation3 + $0x90] ss:$8 sps:$4 sm:$0xff]   ;;  %v3387_v23 = vld [vmem:[#allocation3 + $0xa4] ss:$8 sps:$4 sm:$0xff]  }
  0x41   :  { %740 = vmatprep.mubr.bf16.mxu0 %v2900_v15  ;;  %v3389_v24 = vld [vmem:[#allocation3 + $0xa0] ss:$8 sps:$4 sm:$0xff]   ;;  %v3390_v25 = vld [vmem:[#allocation3 + $0xb4] ss:$8 sps:$4 sm:$0xff]   ;;  %v3392_v26 = vld [vmem:[#allocation3 + $0xb0] ss:$8 sps:$4 sm:$0xff]  }
  0x42   :  { %v1121_v27 = vld [vmem:[%s4390_s2] sm:$0xff]  ;;  %v3396_v31 = vld [vmem:[#allocation3 + $0xd4] ss:$8 sps:$4 sm:$0xff]   ;;  %v3398_v32 = vld [vmem:[#allocation3 + $0xd0] ss:$8 sps:$4 sm:$0xff]  }
  0x43   :  { %713 = vmatpush1.bf16.msra.mxu0 %v3365_v6  ;;  %v3393_v28 = vld [vmem:[#allocation3 + $0xc4] ss:$8 sps:$4 sm:$0xff]   ;;  %1124 = vperm.xlu0 %3356, %v1121_v27   ;;  %v3395_v30 = vld [vmem:[#allocation3 + $0xc0] ss:$8 sps:$4 sm:$0xff]   ;;  %v3402_v35 = vld [vmem:[#allocation3 + $0xf4] ss:$8 sps:$4 sm:$0xff]  }
  0x44   :  { %714 = vmatprep.subr.bf16.mxu0 %v3366_v7  ;;  %v1127_v29 = vld [vmem:[%s4391_s3] sm:$0xff]  ;;  %v3404_v36 = vld [vmem:[#allocation3 + $0xf0] ss:$8 sps:$4 sm:$0xff]   ;;  %v3895_v38 = vld [vmem:[%s4389_s1 + $0x8] sm:$0xff] }
  0x45   :  { %v3399_v33 = vld [vmem:[#allocation3 + $0xe4] ss:$8 sps:$4 sm:$0xff]   ;;  %v3401_v34 = vld [vmem:[#allocation3 + $0xe0] ss:$8 sps:$4 sm:$0xff]   ;;  %v2902_v41 = vcombine.high %v3895_v38, %v3895_v38  ;;  %v3412_v42 = vld [vmem:[#allocation3 + $0x114] ss:$8 sps:$4 sm:$0xff]  }
  0x46   :  { %v3409_v37 = vld [vmem:[#allocation3 + $0x104] ss:$8 sps:$4 sm:$0xff]   ;;  %v3407_v40 = vld [vmem:[#allocation3 + $0x100] ss:$8 sps:$4 sm:$0xff]   ;;  %v3410_v43 = vld [vmem:[#allocation3 + $0x110] ss:$8 sps:$4 sm:$0xff]  }
  0x47   :  { %715 = vmatpush1.bf16.msra.mxu0 %v3368_v8  ;;  %1130 = vperm.xlu0 %3356, %v1127_v29   ;;  %v3415_v44 = vld [vmem:[#allocation3 + $0x124] ss:$8 sps:$4 sm:$0xff]   ;;  %v3413_v45 = vld [vmem:[#allocation3 + $0x120] ss:$8 sps:$4 sm:$0xff]   ;;  %v3418_v46 = vld [vmem:[#allocation3 + $0x134] ss:$8 sps:$4 sm:$0xff]  }
  0x48   :  { %716 = vmatprep.subr.bf16.mxu0 %v3369_v9  ;;  %v3416_v47 = vld [vmem:[#allocation3 + $0x130] ss:$8 sps:$4 sm:$0xff]   ;;  %v3421_v48 = vld [vmem:[#allocation3 + $0x144] ss:$8 sps:$4 sm:$0xff]   ;;  %v3419_v49 = vld [vmem:[#allocation3 + $0x140] ss:$8 sps:$4 sm:$0xff]  }
  0x49   :  { %v3424_v50 = vld [vmem:[#allocation3 + $0x154] ss:$8 sps:$4 sm:$0xff]   ;;  %v3422_v51 = vld [vmem:[#allocation3 + $0x150] ss:$8 sps:$4 sm:$0xff]   ;;  %v3427_v52 = vld [vmem:[#allocation3 + $0x164] ss:$8 sps:$4 sm:$0xff]  }
  0x4a   :  { %v3425_v53 = vld [vmem:[#allocation3 + $0x160] ss:$8 sps:$4 sm:$0xff]   ;;  %v3430_v54 = vld [vmem:[#allocation3 + $0x174] ss:$8 sps:$4 sm:$0xff]   ;;  %v3428_v55 = vld [vmem:[#allocation3 + $0x170] ss:$8 sps:$4 sm:$0xff]  }
  0x4b   :  { %717 = vmatpush1.bf16.msra.mxu0 %v3371_v10  ;;  %v3433_v56 = vld [vmem:[#allocation3 + $0x184] ss:$8 sps:$4 sm:$0xff]   ;;  %v3431_v57 = vld [vmem:[#allocation3 + $0x180] ss:$8 sps:$4 sm:$0xff]   ;;  %v3436_v58 = vld [vmem:[#allocation3 + $0x194] ss:$8 sps:$4 sm:$0xff]  }
  0x4c   :  { %718 = vmatprep.subr.bf16.mxu0 %v3372_v11  ;;  %v3434_v59 = vld [vmem:[#allocation3 + $0x190] ss:$8 sps:$4 sm:$0xff]   ;;  %v3439_v60 = vld [vmem:[#allocation3 + $0x1a4] ss:$8 sps:$4 sm:$0xff]   ;;  %v3437_v61 = vld [vmem:[#allocation3 + $0x1a0] ss:$8 sps:$4 sm:$0xff]  }
  0x4d   :  { %v3442_v62 = vld [vmem:[#allocation3 + $0x1b4] ss:$8 sps:$4 sm:$0xff]   ;;  %v3440_v63 = vld [vmem:[#allocation3 + $0x1b0] ss:$8 sps:$4 sm:$0xff]   ;;  %v3445_v0 = vld [vmem:[#allocation3 + $0x1c4] ss:$8 sps:$4 sm:$0xff]  }
  0x4e   :  { %v3443_v2 = vld [vmem:[#allocation3 + $0x1c0] ss:$8 sps:$4 sm:$0xff]   ;;  %v3448_v3 = vld [vmem:[#allocation3 + $0x1d4] ss:$8 sps:$4 sm:$0xff]   ;;  %v3446_v4 = vld [vmem:[#allocation3 + $0x1d0] ss:$8 sps:$4 sm:$0xff]  }
  0x4f   :  { %719 = vmatpush1.bf16.msra.mxu0 %v3374_v12  ;;  %v3451_v5 = vld [vmem:[#allocation3 + $0x1e4] ss:$8 sps:$4 sm:$0xff]   ;;  %v3449_v6 = vld [vmem:[#allocation3 + $0x1e0] ss:$8 sps:$4 sm:$0xff]   ;;  %v3454_v7 = vld [vmem:[#allocation3 + $0x1f4] ss:$8 sps:$4 sm:$0xff]   ;;  %v2901_v12 = vcombine.low %v3895_v38, %v3895_v38 }
  0x50   :  { %720 = vmatprep.subr.bf16.mxu0 %v3375_v13  ;;  %v3452_v8 = vld [vmem:[#allocation3 + $0x1f0] ss:$8 sps:$4 sm:$0xff]   ;;  %v3459_v9 = vld [vmem:[#allocation3 + $0x204] ss:$8 sps:$4 sm:$0xff]   ;;  %v3457_v11 = vld [vmem:[#allocation3 + $0x200] ss:$8 sps:$4 sm:$0xff]  }
  0x51   :  { %v3902_v10 = vld [vmem:[%s4389_s1 + $0x10] sm:$0xff]  ;;  %v3481_v29 = vld [vmem:[#allocation3 + $0x280] ss:$8 sps:$4 sm:$0xff]  }
  0x52   :  { %v3462_v13 = vld [vmem:[#allocation3 + $0x214] ss:$8 sps:$4 sm:$0xff]   ;;  %v2904_v14 = vcombine.high %v3902_v10, %v3902_v10  ;;  %v3460_v15 = vld [vmem:[#allocation3 + $0x210] ss:$8 sps:$4 sm:$0xff]  }
  0x53   :  { %721 = vmatpush1.bf16.msra.mxu0 %v3377_v16  ;;  %v3465_v16 = vld [vmem:[#allocation3 + $0x224] ss:$8 sps:$4 sm:$0xff]   ;;  %v3478_v27 = vld [vmem:[#allocation3 + $0x270] ss:$8 sps:$4 sm:$0xff]   ;;  %v3492_v38 = vld [vmem:[#allocation3 + $0x2b4] ss:$8 sps:$4 sm:$0xff]  }
  0x54   :  { %722 = vmatprep.subr.bf16.mxu0 %v3378_v17  ;;  %v3463_v17 = vld [vmem:[#allocation3 + $0x220] ss:$8 sps:$4 sm:$0xff]  }
  0x57   :  { %723 = vmatpush1.bf16.msra.mxu0 %v3380_v18  ;;  %v3468_v18 = vld [vmem:[#allocation3 + $0x234] ss:$8 sps:$4 sm:$0xff]  }
  0x58   :  { %724 = vmatprep.subr.bf16.mxu0 %v3381_v19  ;;  %v3466_v19 = vld [vmem:[#allocation3 + $0x230] ss:$8 sps:$4 sm:$0xff]  }
  0x5b   :  { %725 = vmatpush1.bf16.msra.mxu0 %v3383_v20  ;;  %v3471_v20 = vld [vmem:[#allocation3 + $0x244] ss:$8 sps:$4 sm:$0xff]  }
  0x5c   :  { %726 = vmatprep.subr.bf16.mxu0 %v3384_v21  ;;  %v3469_v21 = vld [vmem:[#allocation3 + $0x240] ss:$8 sps:$4 sm:$0xff]  }
  0x5f   :  { %727 = vmatpush1.bf16.msra.mxu0 %v3386_v22  ;;  %v3474_v22 = vld [vmem:[#allocation3 + $0x254] ss:$8 sps:$4 sm:$0xff]  }
  0x60   :  { %728 = vmatprep.subr.bf16.mxu0 %v3387_v23  ;;  %v3472_v23 = vld [vmem:[#allocation3 + $0x250] ss:$8 sps:$4 sm:$0xff]  }
  0x63   :  { %729 = vmatpush1.bf16.msra.mxu0 %v3389_v24  ;;  %v3477_v24 = vld [vmem:[#allocation3 + $0x264] ss:$8 sps:$4 sm:$0xff]  }
  0x64   :  { %730 = vmatprep.subr.bf16.mxu0 %v3390_v25  ;;  %v3475_v25 = vld [vmem:[#allocation3 + $0x260] ss:$8 sps:$4 sm:$0xff]  }
  0x67   :  { %731 = vmatpush1.bf16.msra.mxu0 %v3392_v26  ;;  %v3480_v26 = vld [vmem:[#allocation3 + $0x274] ss:$8 sps:$4 sm:$0xff]  }
  0x68   :  { %732 = vmatprep.subr.bf16.mxu0 %v3393_v28  ;;  %v3483_v28 = vld [vmem:[#allocation3 + $0x284] ss:$8 sps:$4 sm:$0xff]  }
  0x6b   :  { %733 = vmatpush1.bf16.msra.mxu0 %v3395_v30  ;;  %v3486_v30 = vld [vmem:[#allocation3 + $0x294] ss:$8 sps:$4 sm:$0xff]  }
  0x6c   :  { %734 = vmatprep.subr.bf16.mxu0 %v3396_v31  ;;  %v3484_v31 = vld [vmem:[#allocation3 + $0x290] ss:$8 sps:$4 sm:$0xff]  }
  0x6f   :  { %735 = vmatpush1.bf16.msra.mxu0 %v3398_v32  ;;  %v3489_v32 = vld [vmem:[#allocation3 + $0x2a4] ss:$8 sps:$4 sm:$0xff]  }
  0x70   :  { %736 = vmatprep.subr.bf16.mxu0 %v3399_v33  ;;  %v3507_v33 = vld [vmem:[%s4394_s6 + $0x40] sm:$0xff]  }
  0x71   :  { %3192 = vmatprep.subr.bf16.mxu1 %v3507_v33  ;;  %v2903_v33 = vcombine.low %v3902_v10, %v3902_v10 }
  0x73   :  { %737 = vmatpush1.bf16.msra.mxu0 %v3401_v34  ;;  %v3508_v34 = vld [vmem:[%s4394_s6] sm:$0xff]  }
  0x74   :  { %738 = vmatprep.subr.bf16.mxu0 %v3402_v35  ;;  %v3509_v35 = vld [vmem:[%s4394_s6 + $0x48] sm:$0xff]   ;;  %3193 = vmatpush3.bf16.msra.mxu1 %v3508_v34 }
  0x75   :  { %3194 = vmatprep.subr.bf16.mxu1 %v3509_v35 }
  0x77   :  { %739 = vmatpush1.bf16.msra.mxu0 %v3404_v36  ;;  %v3487_v36 = vld [vmem:[#allocation3 + $0x2a0] ss:$8 sps:$4 sm:$0xff]  }
  0x78   :  { %749 = vmatprep.subr.bf16.mxu0 %v3409_v37  ;;  %v3510_v37 = vld [vmem:[%s4394_s6 + $0x8] sm:$0xff]  }
  0x79   :  { %3195 = vmatpush3.bf16.msra.mxu1 %v3510_v37 }
  0x7a   :  { %741 = vmatmul.mubr.bf16.vlgmr.msra.gmra.mrb[0].mxu0 %v2899_v39  ;;  %v3511_v39 = vld [vmem:[%s4394_s6 + $0x50] sm:$0xff]  }
  0x7b   :  { %750 = vmatpush1.bf16.msra.mxu0 %v3407_v40  ;;  %781 = vmatprep.mubr.bf16.mxu0 %v2902_v41  ;;  %v3490_v40 = vld [vmem:[#allocation3 + $0x2b0] ss:$8 sps:$4 sm:$0xff]   ;;  %v3027_v41 = vld [vmem:[%s4398_s10] ss:$0 sm:$0xff] }
  0x7c   :  { %751 = vmatprep.subr.bf16.mxu0 %v3412_v42  ;;  %v3054_v42 = vld [vmem:[%s4398_s10 + $0x1] ss:$0 sm:$0xff]  ;;  %3196 = vmatprep.subr.bf16.mxu1 %v3511_v39 }
  0x7f   :  { %752 = vmatpush1.bf16.msra.mxu0 %v3410_v43  ;;  %v3099_v43 = vld [vmem:[%s4398_s10 + $0x2] ss:$0 sm:$0xff]  ;;  %s4409_s10 = sld [smem:[#allocation10_spill]] }
  0x80   :  { %753 = vmatprep.subr.bf16.mxu0 %v3415_v44 }
  0x83   :  { %754 = vmatpush1.bf16.msra.mxu0 %v3413_v45  ;;  %v3512_v45 = vld [vmem:[%s4394_s6 + $0x10] sm:$0xff]  }
  0x84   :  { %755 = vmatprep.subr.bf16.mxu0 %v3418_v46  ;;  %v3495_v46 = vld [vmem:[#allocation3 + $0x2c4] ss:$8 sps:$4 sm:$0xff]   ;;  %3197 = vmatpush3.bf16.msra.mxu1 %v3512_v45 }
  0x87   :  { %756 = vmatpush1.bf16.msra.mxu0 %v3416_v47  ;;  %v3513_v47 = vld [vmem:[%s4394_s6 + $0x58] sm:$0xff]  }
  0x88   :  { %757 = vmatprep.subr.bf16.mxu0 %v3421_v48  ;;  %v3028_v48 = vld [vmem:[%s4399_s11] ss:$0 sm:$0xff]  ;;  %3198 = vmatprep.subr.bf16.mxu1 %v3513_v47 }
  0x8b   :  { %758 = vmatpush1.bf16.msra.mxu0 %v3419_v49  ;;  %v3056_v49 = vld [vmem:[%s4399_s11 + $0x1] ss:$0 sm:$0xff] }
  0x8c   :  { %759 = vmatprep.subr.bf16.mxu0 %v3424_v50  ;;  %v3101_v50 = vld [vmem:[%s4399_s11 + $0x2] ss:$0 sm:$0xff] }
  0x8f   :  { %760 = vmatpush1.bf16.msra.mxu0 %v3422_v51 }
  0x90   :  { %761 = vmatprep.subr.bf16.mxu0 %v3427_v52 }
  0x93   :  { %762 = vmatpush1.bf16.msra.mxu0 %v3425_v53 }
  0x94   :  { %763 = vmatprep.subr.bf16.mxu0 %v3430_v54  ;;  %v3493_v54 = vld [vmem:[#allocation3 + $0x2c0] ss:$8 sps:$4 sm:$0xff]  }
  0x97   :  { %764 = vmatpush1.bf16.msra.mxu0 %v3428_v55 }
  0x98   :  { %765 = vmatprep.subr.bf16.mxu0 %v3433_v56  ;;  %v3514_v56 = vld [vmem:[%s4394_s6 + $0x18] sm:$0xff]  }
  0x99   :  { %3199 = vmatpush3.bf16.msra.mxu1 %v3514_v56 }
  0x9b   :  { %766 = vmatpush1.bf16.msra.mxu0 %v3431_v57  ;;  %v3498_v57 = vld [vmem:[#allocation3 + $0x2d4] ss:$8 sps:$4 sm:$0xff]  }
  0x9c   :  { %767 = vmatprep.subr.bf16.mxu0 %v3436_v58 }
  0x9f   :  { %768 = vmatpush1.bf16.msra.mxu0 %v3434_v59 }
  0xa0   :  { %769 = vmatprep.subr.bf16.mxu0 %v3439_v60 }
  0xa3   :  { %770 = vmatpush1.bf16.msra.mxu0 %v3437_v61  ;;  %v3515_v61 = vld [vmem:[%s4394_s6 + $0x60] sm:$0xff]  }
  0xa4   :  { %771 = vmatprep.subr.bf16.mxu0 %v3442_v62  ;;  %3200 = vmatprep.subr.bf16.mxu1 %v3515_v61 }
  0xa7   :  { %772 = vmatpush1.bf16.msra.mxu0 %v3440_v63 }
  0xa8   :  { %773 = vmatprep.subr.bf16.mxu0 %v3445_v0 }
  0xab   :  { %774 = vmatpush1.bf16.msra.mxu0 %v3443_v2  ;;  %v3496_v2 = vld [vmem:[#allocation3 + $0x2d0] ss:$8 sps:$4 sm:$0xff]  }
  0xac   :  { %775 = vmatprep.subr.bf16.mxu0 %v3448_v3  ;;  %v3501_v3 = vld [vmem:[#allocation3 + $0x2e4] ss:$8 sps:$4 sm:$0xff]  }
  0xaf   :  { %776 = vmatpush1.bf16.msra.mxu0 %v3446_v4  ;;  %v3516_v4 = vld [vmem:[%s4394_s6 + $0x20] sm:$0xff]  }
  0xb0   :  { %777 = vmatprep.subr.bf16.mxu0 %v3451_v5  ;;  %3201 = vmatpush3.bf16.msra.mxu1 %v3516_v4 }
  0xb3   :  { %778 = vmatpush1.bf16.msra.mxu0 %v3449_v6 }
  0xb4   :  { %779 = vmatprep.subr.bf16.mxu0 %v3454_v7 }
  0xb7   :  { %780 = vmatpush1.bf16.msra.mxu0 %v3452_v8 }
  0xb8   :  { %790 = vmatprep.subr.bf16.mxu0 %v3459_v9  ;;  %v3517_v9 = vld [vmem:[%s4394_s6 + $0x68] sm:$0xff]  }
  0xb9   :  { %3202 = vmatprep.subr.bf16.mxu1 %v3517_v9 }
  0xba   :  { %782 = vmatmul.mubr.bf16.vlgmr.msra.gmra.mrb[0].mxu0 %v2901_v12  ;;  %v3499_v12 = vld [vmem:[#allocation3 + $0x2e0] ss:$8 sps:$4 sm:$0xff]  }
  0xbb   :  { %791 = vmatpush1.bf16.msra.mxu0 %v3457_v11  ;;  %822 = vmatprep.mubr.bf16.mxu0 %v2904_v14 }
  0xbc   :  { %792 = vmatprep.subr.bf16.mxu0 %v3462_v13 }
  0xbf   :  { %793 = vmatpush1.bf16.msra.mxu0 %v3460_v15 }
  0xc0   :  { %794 = vmatprep.subr.bf16.mxu0 %v3465_v16 }
  0xc2   :  { %v1125_v44 = vpop.permute.xlu0 %1124 }
  0xc3   :  { %795 = vmatpush1.bf16.msra.mxu0 %v3463_v17  ;;  %v1140_v51 = vmul.f32 %v3027_v41, %v1125_v44  ;;  %v1523_v52 = vmul.f32 %v3054_v42, %v1125_v44  ;;  %v1908_v53 = vmul.f32 %v3099_v43, %v1125_v44  ;;  %v3747_v42 = vmov 683565275  }
  0xc4   :  { %796 = vmatprep.subr.bf16.mxu0 %v3468_v18  ;;  %v3518_v18 = vld [vmem:[%s4394_s6 + $0x28] sm:$0xff]   ;;  %v3748_v44 = vmov 2475754826  }
  0xc5   :  { %3203 = vmatpush3.bf16.msra.mxu1 %v3518_v18 }
  0xc6   :  { %v1131_v55 = vpop.permute.xlu0 %1130 }
  0xc7   :  { %797 = vmatpush1.bf16.msra.mxu0 %v3466_v19  ;;  %v1148_v58 = vmul.f32 %v3028_v48, %v1131_v55  ;;  %v1532_v59 = vmul.f32 %v3056_v49, %v1131_v55  ;;  %v1917_v60 = vmul.f32 %v3101_v50, %v1131_v55  ;;  %v3504_v19 = vld [vmem:[#allocation3 + $0x2f4] ss:$8 sps:$4 sm:$0xff]   ;;  %v3750_v48 = vmov 2102212464  }
  0xc8   :  { %798 = vmatprep.subr.bf16.mxu0 %v3471_v20  ;;  %v3751_v50 = vmov 920167782  }
  0xc9   :  { %v3953_v62 = vadd.f32 %v1148_v58, %v1140_v51  ;;  %v3955_v63 = vadd.f32 %v1532_v59, %v1523_v52  ;;  %v3957_v0 = vadd.f32 %v1917_v60, %v1908_v53  ;;  %v3752_v58 = vmov 1326507024  }
  0xcb   :  { %799 = vmatpush1.bf16.msra.mxu0 %v3469_v21  ;;  %v1153_v5 = vand.u32 2139095040, %v3953_v62  ;;  %v1537_v6 = vand.u32 2139095040, %v3955_v63  ;;  %v1922_v7 = vand.u32 2139095040, %v3957_v0  ;;  %v1150_v8 = vand.u32 2147483647, %v3953_v62 }
  0xcc   :  { %800 = vmatprep.subr.bf16.mxu0 %v3474_v22  ;;  %v1919_v11 = vand.u32 2147483647, %v3957_v0  ;;  %v1534_v35 = vand.u32 2147483647, %v3955_v63 }
  0xcd   :  { %v1154_v13 = vshrl.u32 %v1153_v5, 23  ;;  %v1538_v14 = vshrl.u32 %v1537_v6, 23  ;;  %v1923_v15 = vshrl.u32 %v1922_v7, 23  ;;  %v1157_v16 = vand.u32 8388607, %v1150_v8 }
  0xce   :  { %v1926_v17 = vand.u32 8388607, %v1919_v11 }
  0xcf   :  { %801 = vmatpush1.bf16.msra.mxu0 %v3472_v23  ;;  %v3029_v20 = vadd.s32 4294967169, %v1154_v13  ;;  %v3057_v21 = vadd.s32 4294967169, %v1538_v14  ;;  %v3102_v22 = vadd.s32 4294967169, %v1923_v15  ;;  %v3519_v23 = vld [vmem:[%s4394_s6 + $0x70] sm:$0xff]  }
  0xd0   :  { %802 = vmatprep.subr.bf16.mxu0 %v3477_v24  ;;  %v3502_v24 = vld [vmem:[#allocation3 + $0x2f0] ss:$8 sps:$4 sm:$0xff]   ;;  %3204 = vmatprep.subr.bf16.mxu1 %v3519_v23 }
  0xd3   :  { %803 = vmatpush1.bf16.msra.mxu0 %v3475_v25  ;;  %v1160_v25 = vadd.s32 1, %v3029_v20 }
  0xd4   :  { %804 = vmatprep.subr.bf16.mxu0 %v3480_v26  ;;  %v1544_v26 = vadd.s32 1, %v3057_v21 }
  0xd5   :  { %vm1161_vm0 = vcmp.gt.s32.totalorder %v1160_v25, 0 }
  0xd6   :  { %vm1545_vm1 = vcmp.gt.s32.totalorder %v1544_v26, 0 }
  0xd7   :  { %805 = vmatpush1.bf16.msra.mxu0 %v3478_v27  ;;  %v1929_v27 = vadd.s32 1, %v3102_v22 }
  0xd8   :  { %806 = vmatprep.subr.bf16.mxu0 %v3483_v28  ;;  %v1158_v28 = vor.u32 8388608, %v1157_v16 }
  0xd9   :  { %vm1930_vm2 = vcmp.gt.s32.totalorder %v1929_v27, 0 }
  0xdb   :  { %807 = vmatpush1.bf16.msra.mxu0 %v3481_v29  ;;  %v1927_v29 = vor.u32 8388608, %v1926_v17 }
  0xdc   :  { %808 = vmatprep.subr.bf16.mxu0 %v3486_v30  ;;  %v1162_v30 = vsel %vm1161_vm0, %v1160_v25, 0 }
  0xdd   :  { %v1164_v34 = vand.u32 31, %v1162_v30  ;;  %v3987_v39 = vshll.u32 %v1927_v29, 8 }
  0xdf   :  { %809 = vmatpush1.bf16.msra.mxu0 %v3484_v31  ;;  %v3980_v31 = vsel %vm1545_vm1, %v1544_v26, 0  ;;  %v1167_v43 = vshll.u32 %v3747_v42, %v1164_v34  ;;  %v1170_v10 = vshll.u32 %v3748_v44, %v1164_v34  ;;  %v1176_v49 = vshll.u32 %v3750_v48, %v1164_v34 }
  0xe0   :  { %810 = vmatprep.subr.bf16.mxu0 %v3489_v32  ;;  %v1931_v32 = vsel %vm1930_vm2, %v1929_v27, 0  ;;  %v3990_v41 = vand.u32 31, %v3980_v31  ;;  %v1179_v51 = vshll.u32 %v3751_v50, %v1164_v34 }
  0xe1   :  { %v1933_v37 = vand.u32 31, %v1931_v32  ;;  %v3994_v45 = vshrl.u32 %v1931_v32, 5 }
  0xe3   :  { %811 = vmatpush1.bf16.msra.mxu0 %v3487_v36  ;;  %v1163_v36 = vshrl.u32 %v1162_v30, 5  ;;  %v1934_v56 = vsub.s32 32, %v1933_v37  ;;  %v1936_v15 = vshll.u32 %v3747_v42, %v1933_v37  ;;  %v1939_v23 = vshll.u32 %v3748_v44, %v1933_v37 }
  0xe4   :  { %812 = vmatprep.subr.bf16.mxu0 %v3492_v38  ;;  %v3985_v38 = vshll.u32 %v1158_v28, 8  ;;  %vm1951_vm7 = vcmp.lt.s32.totalorder %v3994_v45, 1  ;;  %vm1952_vm9 = vcmp.lt.s32.totalorder %v3994_v45, 2  ;;  %vm1953_vm10 = vcmp.lt.s32.totalorder %v3994_v45, 3 }
  0xe5   :  { %vm1182_vm3 = vcmp.lt.s32.totalorder %v1163_v36, 1  ;;  %vm1183_vm4 = vcmp.lt.s32.totalorder %v1163_v36, 2  ;;  %vm1184_vm5 = vcmp.lt.s32.totalorder %v1163_v36, 3  ;;  %vm1185_vm6 = vcmp.lt.s32.totalorder %v1163_v36, 4 }
  0xe6   :  { %v1935_v18 = vshrl.u32 %v3747_v42, %v1934_v56  ;;  %v1943_v32 = vshrl.u32 %v3750_v48, %v1934_v56  ;;  %v1948_v36 = vshll.u32 %v3751_v50, %v1933_v37  ;;  %vm1954_vm11 = vcmp.lt.s32.totalorder %v3994_v45, 4 }
  0xe7   :  { %813 = vmatpush1.bf16.msra.mxu0 %v3490_v40  ;;  %v1165_v40 = vsub.s32 32, %v1164_v34  ;;  %v1554_v45 = vshll.u32 %v3748_v44, %v3990_v41 }
  0xe8   :  { %814 = vmatprep.subr.bf16.mxu0 %v3495_v46  ;;  %v3749_v46 = vmov 2131351028  }
  0xe9   :  { %v1173_v47 = vshll.u32 %v3749_v46, %v1164_v34  ;;  %v1166_v52 = vshrl.u32 %v3747_v42, %v1165_v40  ;;  %v1168_v53 = vshrl.u32 %v3748_v44, %v1165_v40  ;;  %v1174_v55 = vshrl.u32 %v3750_v48, %v1165_v40 }
  0xea   :  { %v1180_v59 = vshrl.u32 %v3752_v58, %v1165_v40  ;;  %v1940_v29 = vshrl.u32 %v3749_v46, %v1934_v56  ;;  %v1942_v30 = vshll.u32 %v3749_v46, %v1933_v37  ;;  %v1946_v34 = vshrl.u32 %v3751_v50, %v1934_v56 }
  0xeb   :  { %815 = vmatpush1.bf16.msra.mxu0 %v3493_v54  ;;  %v1171_v54 = vshrl.u32 %v3749_v46, %v1165_v40  ;;  %v1169_v60 = vor.u32 %v1168_v53, %v1167_v43 }
  0xec   :  { %816 = vmatprep.subr.bf16.mxu0 %v3498_v57  ;;  %v1177_v57 = vshrl.u32 %v3751_v50, %v1165_v40  ;;  %v1181_v4 = vor.u32 %v1180_v59, %v1179_v51  ;;  %v1949_v40 = vshrl.u32 %v3752_v58, %v1934_v56 }
  0xed   :  { %v1172_v61 = vor.u32 %v1171_v54, %v1170_v10  ;;  %v1186_v5 = vsel %vm1182_vm3, %v1166_v52, %v1169_v60  ;;  %v1941_v10 = vor.u32 %v1940_v29, %v1939_v23  ;;  %v1560_v23 = vshll.u32 %v3750_v48, %v3990_v41 }
  0xee   :  { %v1195_v14 = vsel %vm1185_vm6, %v1181_v4, 1326507024  ;;  %v1950_v52 = vor.u32 %v1949_v40, %v1948_v36 }
  0xef   :  { %817 = vmatpush1.bf16.msra.mxu0 %v3496_v2  ;;  %v1175_v2 = vor.u32 %v1174_v55, %v1173_v47  ;;  %v1190_v7 = vsel %vm1182_vm3, %v1169_v60, %v1172_v61  ;;  %v1944_v47 = vor.u32 %v1943_v32, %v1942_v30  ;;  %v1563_v30 = vshll.u32 %v3751_v50, %v3990_v41 }
  0xf0   :  { %818 = vmatprep.subr.bf16.mxu0 %v3501_v3  ;;  %v1178_v3 = vor.u32 %v1177_v57, %v1176_v49  ;;  %v1964_v4 = vsel %vm1954_vm11, %v1950_v52, 1326507024 }
  0xf1   :  { %v1187_v6 = vsel %vm1185_vm6, %v1175_v2, 2102212464  ;;  %v1194_v9 = vsel %vm1182_vm3, %v1172_v61, %v1175_v2  ;;  %v1956_v53 = vsel %vm1954_vm11, %v1944_v47, 2102212464  ;;  %v1963_v60 = vsel %vm1951_vm7, %v1941_v10, %v1944_v47 }
  0xf2   :  { %v1191_v13 = vsel %vm1185_vm6, %v1178_v3, 920167782  ;;  %v1196_v17 = vsel %vm1184_vm5, %v1178_v3, %v1195_v14  ;;  %v1957_v57 = vsel %vm1953_vm10, %v1941_v10, %v1956_v53  ;;  %vm1152_vm3 = vcmp.lt.s32.totalorder %v3953_v62, 0 }
  0xf3   :  { %819 = vmatpush1.bf16.msra.mxu0 %v3499_v12  ;;  %v1188_v12 = vsel %vm1184_vm5, %v1172_v61, %v1187_v6  ;;  %v1192_v16 = vsel %vm1184_vm5, %v1175_v2, %v1191_v13  ;;  %v1197_v22 = vsel %vm1183_vm4, %v1194_v9, %v1196_v17  ;;  %v1549_v61 = vsub.s32 32, %v3990_v41 }
  0xf4   :  { %820 = vmatprep.subr.bf16.mxu0 %v3504_v19  ;;  %v1937_v19 = vshrl.u32 %v3748_v44, %v1934_v56  ;;  %v1189_v20 = vsel %vm1183_vm4, %v1186_v5, %v1188_v12  ;;  %v1193_v21 = vsel %vm1183_vm4, %v1190_v7, %v1192_v16  ;;  %v1541_v13 = vand.u32 8388607, %v1534_v35 }
  0xf5   :  { %v4017_v26 = vmul.u32.u64.low %v3985_v38, %v1193_v21  ;;  %v4018_v27 = vmul.u32.u64.high %v3985_v38, %v1193_v21, %v4017_v26  ;;  %v1205_v43 = vmul.u32 %v3985_v38, %v1189_v20  ;;  %vm1151_vm5 = vcmp.le.f32.partialorder %v1150_v8, 0.7853982 }
  0xf6   :  { %v1938_v28 = vor.u32 %v1937_v19, %v1936_v15  ;;  %v1552_v19 = vshrl.u32 %v3748_v44, %v1549_v61  ;;  %v1558_v44 = vshrl.u32 %v3750_v48, %v1549_v61  ;;  %vm1921_vm6 = vcmp.lt.s32.totalorder %v3957_v0, 0 }
  0xf7   :  { %821 = vmatpush1.bf16.msra.mxu0 %v3502_v24  ;;  %v4013_v24 = vmul.u32.u64.low %v3985_v38, %v1197_v22  ;;  %v4014_v25 = vmul.u32.u64.high %v3985_v38, %v1197_v22, %v4013_v24  ;;  %v1208_v49 = vadd.s32 1, %v4018_v27  ;;  %v1555_v22 = vshrl.u32 %v3749_v46, %v1549_v61 }
  0xf8   :  { %v1959_v54 = vsel %vm1951_vm7, %v1938_v28, %v1941_v10  ;;  %v1547_v24 = vshrl.u32 %v3980_v31, 5  ;;  %v1564_v31 = vshrl.u32 %v3752_v58, %v1549_v61 }
  0xf9   :  { %vm1207_vm8 = vc.u32 %v4014_v25, %v4017_v26  ;;  %v1556_v40 = vor.u32 %v1555_v22, %v1554_v45 }
  0xfa   :  { %823 = vmatmul.mubr.bf16.vlgmr.msra.gmra.mrb[0].mxu0 %v2903_v33  ;;  %v1945_v33 = vshll.u32 %v3750_v48, %v1933_v37  ;;  %v1955_v37 = vsel %vm1951_vm7, %v1935_v18, %v1938_v28  ;;  %v1209_v38 = vsel %vm1207_vm8, %v1208_v49, %v4018_v27  ;;  %v1551_v18 = vshll.u32 %v3747_v42, %v3990_v41 }
  0xfb   :  { %v1210_v56 = vadd.s32 %v1209_v38, %v1205_v43  ;;  %v1958_v2 = vsel %vm1952_vm9, %v1955_v37, %v1957_v57  ;;  %v1557_v27 = vshll.u32 %v3749_v46, %v3990_v41  ;;  %v1561_v28 = vshrl.u32 %v3751_v50, %v1549_v61 }
  0xfc   :  { %v1947_v51 = vor.u32 %v1946_v34, %v1945_v33  ;;  %v1974_v17 = vmul.u32 %v3987_v39, %v1958_v2  ;;  %v1553_v33 = vor.u32 %v1552_v19, %v1551_v18  ;;  %vm1566_vm13 = vcmp.lt.s32.totalorder %v1547_v24, 1 }
  0xfd   :  { %v1211_v5 = vadd.s32 536870912, %v1210_v56  ;;  %v1562_v46 = vor.u32 %v1561_v28, %v1560_v23  ;;  %v1559_v49 = vor.u32 %v1558_v44, %v1557_v27  ;;  %vm1567_vm14 = vcmp.lt.s32.totalorder %v1547_v24, 2 }
  0xfe   :  { %v1960_v55 = vsel %vm1954_vm11, %v1947_v51, 920167782  ;;  %v1965_v6 = vsel %vm1953_vm10, %v1947_v51, %v1964_v4  ;;  %v1565_v51 = vor.u32 %v1564_v31, %v1563_v30  ;;  %vm1568_vm15 = vcmp.lt.s32.totalorder %v1547_v24, 3 }
  0xff   :  { %v1961_v59 = vsel %vm1953_vm10, %v1944_v47, %v1960_v55  ;;  %v1966_v12 = vsel %vm1952_vm9, %v1963_v60, %v1965_v6  ;;  %v4063_v14 = vshrl.u32 %v1211_v5, 30  ;;  %v1550_v47 = vshrl.u32 %v3747_v42, %v1549_v61 }
 0x100   :  { %v1962_v3 = vsel %vm1952_vm9, %v1959_v54, %v1961_v59  ;;  %v4066_v15 = vmul.u32.u64.low %v3987_v39, %v1966_v12  ;;  %v4067_v16 = vmul.u32.u64.high %v3987_v39, %v1966_v12, %v4066_v15  ;;  %vm1569_vm0 = vcmp.lt.s32.totalorder %v1547_v24, 4 }
 0x101   :  { %v4055_v7 = vmul.u32.u64.low %v3987_v39, %v1962_v3  ;;  %v4056_v9 = vmul.u32.u64.high %v3987_v39, %v1962_v3, %v4055_v7  ;;  %v1213_v20 = vshll.u32 %v4063_v14, 30  ;;  %v1542_v39 = vor.u32 8388608, %v1541_v13 }
 0x102   :  { %v1571_v50 = vsel %vm1569_vm0, %v1559_v49, 2102212464  ;;  %v1574_v52 = vsel %vm1566_vm13, %v1553_v33, %v1556_v40  ;;  %v1575_v58 = vsel %vm1569_vm0, %v1562_v46, 920167782  ;;  %v1206_v38 = vadd.s32 %v4017_v26, %v4014_v25 }
 0x103   :  { %v1977_v21 = vadd.s32 1, %v4056_v9  ;;  %v1214_v29 = vsub.s32 %v1210_v56, %v1213_v20  ;;  %vm1976_vm12 = vc.u32 %v4067_v16, %v4055_v7  ;;  %v1582_v43 = vshll.u32 %v1542_v39, 8 }
 0x104   :  { %v1570_v54 = vsel %vm1566_vm13, %v1550_v47, %v1553_v33  ;;  %v1576_v42 = vsel %vm1568_vm15, %v1559_v49, %v1575_v58  ;;  %v1572_v56 = vsel %vm1568_vm15, %v1556_v40, %v1571_v50  ;;  %v1578_v59 = vsel %vm1566_vm13, %v1556_v40, %v1559_v49 }
 0x105   :  { %v1978_v32 = vsel %vm1976_vm12, %v1977_v21, %v4056_v9  ;;  %v1216_v34 = vsub.s32 0, %v1214_v29  ;;  %v1577_v57 = vsel %vm1567_vm14, %v1574_v52, %v1576_v42  ;;  %v1579_v60 = vsel %vm1569_vm0, %v1565_v51, 1326507024 }
 0x106   :  { %v1979_v36 = vadd.s32 %v1978_v32, %v1974_v17  ;;  %v4103_v61 = vmul.u32.u64.low %v1582_v43, %v1577_v57  ;;  %v4104_v2 = vmul.u32.u64.high %v1582_v43, %v1577_v57, %v4103_v61  ;;  %v1580_v3 = vsel %vm1568_vm15, %v1562_v46, %v1579_v60 }
 0x107   :  { %v3030_v10 = vmin.u32 %v1216_v34, %v1214_v29  ;;  %v1573_v12 = vsel %vm1567_vm14, %v1570_v54, %v1572_v56  ;;  %v1581_v13 = vsel %vm1567_vm14, %v1578_v59, %v1580_v3  ;;  %v1975_v32 = vadd.s32 %v4055_v7, %v4067_v16 }
 0x108   :  { %v1980_v48 = vadd.s32 536870912, %v1979_v36  ;;  %v4110_v18 = vmul.u32.u64.low %v1582_v43, %v1581_v13  ;;  %v4111_v19 = vmul.u32.u64.high %v1582_v43, %v1581_v13, %v4110_v18  ;;  %v1589_v23 = vmul.u32 %v1582_v43, %v1573_v12 }
 0x109   :  { %v1218_v41 = vclz %v3030_v10  ;;  %v1592_v39 = vadd.s32 1, %v4104_v2  ;;  %vm1920_vm7 = vcmp.le.f32.partialorder %v1919_v11, 0.7853982  ;;  %vm1242_vm8 = vweird.f32 %v3953_v62 }
 0x10a   :  { %v4093_v37 = vshrl.u32 %v1980_v48, 30  ;;  %vm1591_vm2 = vc.u32 %v4111_v19, %v4103_v61  ;;  %v1590_v11 = vadd.s32 %v4103_v61, %v4111_v19 }
 0x10b   :  { %v3031_v53 = vadd.s32 4294967294, %v1218_v41  ;;  %v1593_v30 = vsel %vm1591_vm2, %v1592_v39, %v4104_v2 }
 0x10c   :  { %v1982_v55 = vshll.u32 %v4093_v37, 30  ;;  %v1594_v33 = vadd.s32 %v1593_v30, %v1589_v23  ;;  %v2005_v54 = vsub.s32 4, %v4093_v37 }
 0x10d   :  { %vm3032_vm1 = vcmp.lt.s32.totalorder %v3031_v53, 0 }
 0x10e   :  { %v1221_v25 = vsel %vm3032_vm1, 0, %v3031_v53  ;;  %v1983_v26 = vsub.s32 %v1979_v36, %v1982_v55  ;;  %v1595_v10 = vadd.s32 536870912, %v1594_v33  ;;  %v2006_v2 = vsel %vm1921_vm6, %v2005_v54, %v4093_v37 }
 0x10f   :  { %v1222_v4 = vsub.s32 32, %v1221_v25  ;;  %v1223_v5 = vshll.u32 %v1214_v29, %v1221_v25  ;;  %v1226_v6 = vsub.s32 4294967266, %v1221_v25  ;;  %v1236_v29 = vsub.s32 4, %v4063_v14 }
 0x110   :  { %v1985_v9 = vsub.s32 0, %v1983_v26  ;;  %v4126_v48 = vshrl.u32 %v1595_v10, 30 }
 0x111   :  { %v1224_v15 = vshrl.u32 %v1206_v38, %v1222_v4  ;;  %v1227_v17 = vadd.s32 127, %v1226_v6  ;;  %v1237_v34 = vsel %vm1152_vm3, %v1236_v29, %v4063_v14  ;;  %v2008_v4 = vsel %vm1920_vm7, 0, %v2006_v2 }
 0x112   :  { %v3103_v45 = vmin.u32 %v1985_v9, %v1983_v26  ;;  %v1239_v16 = vsel %vm1151_vm5, 0, %v1237_v34  ;;  %v1597_v52 = vshll.u32 %v4126_v48, 30 }
 0x113   :  { %v1225_v20 = vor.u32 %v1224_v15, %v1223_v5  ;;  %v1228_v21 = vshll.u32 %v1227_v17, 23  ;;  %v1346_v53 = vadd.s32 3, %v1239_v16  ;;  %v1243_v56 = vand.u32 3, %v1239_v16 }
 0x114   :  { %v1987_v22 = vclz %v3103_v45  ;;  %v1598_v8 = vsub.s32 %v1594_v33, %v1597_v52  ;;  %v2115_v15 = vadd.s32 3, %v2008_v4 }
 0x115   :  { %v1229_v27 = vor.u32 4788187, %v1228_v21  ;;  %v1232_v28 = vcvt.s32.f32 %v1225_v20  ;;  %v1347_v60 = vand.u32 3, %v1346_v53  ;;  %vm1244_vm9 = vcmp.lt.s32.totalorder %v1243_v56, 2 }
 0x116   :  { %v3104_v44 = vadd.s32 4294967294, %v1987_v22  ;;  %v1600_v55 = vsub.s32 0, %v1598_v8  ;;  %vm1245_vm10 = vcmp.eq.s32.totalorder %v1243_v56, 0  ;;  %vm1248_vm11 = vcmp.eq.s32.totalorder %v1243_v56, 2 }
 0x117   :  { %v1230_v24 = vand.u32 2147483647, %v1229_v27  ;;  %vm1348_vm12 = vcmp.lt.s32.totalorder %v1347_v60, 2  ;;  %vm1349_vm13 = vcmp.eq.s32.totalorder %v1347_v60, 0  ;;  %vm1352_vm14 = vcmp.eq.s32.totalorder %v1347_v60, 2 }
 0x118   :  { %vm3105_vm4 = vcmp.lt.s32.totalorder %v3104_v44, 0  ;;  %v3058_v59 = vmin.u32 %v1600_v55, %v1598_v8  ;;  %v2116_v30 = vand.u32 3, %v2115_v15  ;;  %v197_v15 = vlaneseq }
 0x119   :  { %v1233_v31 = vmul.f32 %v1232_v28, %v1230_v24  ;;  %v1990_v36 = vsel %vm3105_vm4, 0, %v3104_v44  ;;  %v2012_v24 = vand.u32 3, %v2008_v4 }
 0x11a   :  { %v1991_v40 = vsub.s32 32, %v1990_v36  ;;  %v1992_v46 = vshll.u32 %v1983_v26, %v1990_v36  ;;  %v1995_v43 = vsub.s32 4294967266, %v1990_v36  ;;  %v1602_v26 = vclz %v3058_v59 }
 0x11b   :  { %v1234_v47 = vxor.u32 2147483648, %v1233_v31  ;;  %vm2014_vm0 = vcmp.eq.s32.totalorder %v2012_v24, 0  ;;  %vm2017_vm1 = vcmp.eq.s32.totalorder %v2012_v24, 2  ;;  %vm2121_vm2 = vcmp.eq.s32.totalorder %v2116_v30, 2 }
 0x11c   :  { %v1993_v49 = vshrl.u32 %v1975_v32, %v1991_v40  ;;  %v1996_v51 = vadd.s32 127, %v1995_v43  ;;  %v3059_v5 = vadd.s32 4294967294, %v1602_v26  ;;  %vm2013_vm4 = vcmp.lt.s32.totalorder %v2012_v24, 2 }
 0x11d   :  { %v1235_v7 = vsel %vm1152_vm3, %v1234_v47, %v1233_v31  ;;  %vm2118_vm3 = vcmp.eq.s32.totalorder %v2116_v30, 0  ;;  %v3753_v59 = vmov 0.0  }
 0x11e   :  { %v1238_v41 = vsel %vm1151_vm5, %v3953_v62, %v1235_v7  ;;  %v1994_v14 = vor.u32 %v1993_v49, %v1992_v46  ;;  %v1997_v50 = vshll.u32 %v1996_v51, 23  ;;  %vm3060_vm15 = vcmp.lt.s32.totalorder %v3059_v5, 0 }
 0x11f   :  { %3651 = vcosq.f32 %v1238_v41  ;;  %v1605_v17 = vsel %vm3060_vm15, 0, %v3059_v5  ;;  %v1620_v62 = vsub.s32 4, %v4126_v48  ;;  %vm2117_vm5 = vcmp.lt.s32.totalorder %v2116_v30, 2  ;;  %v3524_v30 = vld [vmem:[#allocation5 + $0x8] sm:$0xff]  }
 0x120   :  { %3653 = vsinq.f32 %v1238_v41  ;;  %v1998_v58 = vor.u32 4788187, %v1997_v50  ;;  %v2001_v38 = vcvt.s32.f32 %v1994_v14  ;;  %v1606_v20 = vsub.s32 32, %v1605_v17 }
 0x121   :  { %v1607_v21 = vshll.u32 %v1598_v8, %v1605_v17  ;;  %v1610_v39 = vsub.s32 4294967266, %v1605_v17  ;;  %vm1626_vm15 = vweird.f32 %v3955_v63  ;;  %v198_v17 = vshrl.u32 %v197_v15, 7  ;;  %v3567_v15 = vld [vmem:[%s4400_s12 + $0xc0] ss:$8 sps:$4 sm:$0xff]  }
 0x122   :  { %v1999_v42 = vand.u32 2147483647, %v1998_v58  ;;  %v1608_v61 = vshrl.u32 %v1590_v11, %v1606_v20 }
 0x123   :  { %v1611_v44 = vadd.s32 127, %v1610_v39 }
 0x124   :  { %v2002_v57 = vmul.f32 %v2001_v38, %v1999_v42  ;;  %v1609_v32 = vor.u32 %v1608_v61, %v1607_v21  ;;  %v3522_v42 = vld [vmem:[%s4394_s6 + $0x38] sm:$0xff]  }
 0x125   :  { %v1612_v33 = vshll.u32 %v1611_v44, 23  ;;  %v3523_v44 = vld [vmem:[#allocation5] sm:$0xff]  }
 0x126   :  { %v2003_v25 = vxor.u32 2147483648, %v2002_v57  ;;  %v1616_v34 = vcvt.s32.f32 %v1609_v32  ;;  %v3525_v32 = vld [vmem:[#allocation5 + $0x10] sm:$0xff]  }
 0x127   :  { %v1613_v31 = vor.u32 4788187, %v1612_v33  ;;  %v3526_v33 = vld [vmem:[#allocation5 + $0x18] sm:$0xff]  }
 0x128   :  { %v2004_v3 = vsel %vm1921_vm6, %v2003_v25, %v2002_v57  ;;  %vm2011_vm6 = vweird.f32 %v3957_v0 }
 0x129   :  { %v3652_v6 = vpop.eup %3651  ;;  %v2007_v9 = vsel %vm1920_vm7, %v3957_v0, %v2004_v3  ;;  %v1614_v43 = vand.u32 2147483647, %v1613_v31  ;;  %vm1535_vm7 = vcmp.le.f32.partialorder %v1534_v35, 0.7853982  ;;  %v3520_v35 = vld [vmem:[%s4394_s6 + $0x30] sm:$0xff]   ;;  %v3527_v31 = vld [vmem:[#allocation5 + $0x20] sm:$0xff]  }
 0x12a   :  { %v3654_v37 = vpop.eup %3653  ;;  %v1249_v12 = vxor.u32 2147483648, %v3652_v6  ;;  %3655 = vcosq.f32 %v2007_v9  ;;  %3205 = vmatpush3.bf16.msra.mxu1 %v3520_v35  ;;  %v3543_v35 = vld [vmem:[%s4400_s12 + $0x40] ss:$8 sps:$4 sm:$0xff]  }
 0x12b   :  { %v1246_v13 = vxor.u32 2147483648, %v3654_v37  ;;  %3657 = vsinq.f32 %v2007_v9  ;;  %v1617_v51 = vmul.f32 %v1616_v34, %v1614_v43  ;;  %v3528_v34 = vld [vmem:[#allocation5 + $0x28] sm:$0xff]  }
 0x12c   :  { %v1354_v18 = vsel %vm1352_vm14, %v1249_v12, %v3654_v37  ;;  %v1250_v45 = vsel %vm1248_vm11, %v1249_v12, %v3654_v37 }
 0x12d   :  { %v1351_v22 = vsel %vm1349_vm13, %v3652_v6, %v1246_v13  ;;  %v1247_v23 = vsel %vm1245_vm10, %v3652_v6, %v1246_v13  ;;  %v1618_v50 = vxor.u32 2147483648, %v1617_v51 }
 0x12e   :  { %v1355_v27 = vsel %vm1348_vm12, %v1351_v22, %v1354_v18  ;;  %v1251_v28 = vsel %vm1244_vm9, %v1247_v23, %v1250_v45  ;;  %v4179_v18 = vsub.s32 0, %v198_v17  ;;  %v4184_v45 = vsub.s32 1, %v198_v17  ;;  %v3572_v17 = vld [vmem:[%s4400_s12 + $0xd4] ss:$8 sps:$4 sm:$0xff]  }
 0x12f   :  { %v1356_v19 = vsel %vm1242_vm8, nan, %v1355_v27  ;;  %v4150_v29 = vsel %vm1242_vm8, nan, %v1251_v28  ;;  %vm1536_vm8 = vcmp.lt.s32.totalorder %v3955_v63, 0 }
 0x130   :  { %1358 = vrot.lane.b32.xlu1 %v1356_v19, %s4408_s4  ;;  %v1621_v52 = vsel %vm1536_vm8, %v1620_v62, %v4126_v48  ;;  %v1619_v0 = vsel %vm1536_vm8, %v1618_v50, %v1617_v51  ;;  %v3521_v48 = vld [vmem:[%s4394_s6 + $0x78] sm:$0xff]   ;;  %v3001_v62 = vld [vmem:[%s4395_s7] ss:$0 sm:$0xff] }
 0x131   :  { %v1622_v8 = vsel %vm1535_vm7, %v3955_v63, %v1619_v0  ;;  %v1623_v53 = vsel %vm1535_vm7, 0, %v1621_v52  ;;  %3206 = vmatprep.subr.bf16.mxu1 %v3521_v48  ;;  %v195_v63 = vld [vmem:[%s4393_s5] sm:$0x3]  ;;  %v3536_v50 = vld [vmem:[%s4400_s12 + $0x14] ss:$8 sps:$4 sm:$0xff]  }
 0x132   :  { %3659 = vcosq.f32 %v1622_v8  ;;  %v1730_v54 = vadd.s32 3, %v1623_v53  ;;  %v1627_v55 = vand.u32 3, %v1623_v53  ;;  %3207 = vmatpush3.bf16.msra.mxu1 %v3522_v42  ;;  %v200_v20 = vrot.slane %v195_v63, %v4179_v18  ;;  %v3534_v52 = vld [vmem:[%s4400_s12 + $0x10] ss:$8 sps:$4 sm:$0xff]   ;;  %v3542_v0 = vld [vmem:[%s4400_s12 + $0x34] ss:$8 sps:$4 sm:$0xff]  }
 0x133   :  { %3661 = vsinq.f32 %v1622_v8  ;;  %3291 = vmatprep.subr.bf16.mxu1 %v3753_v59  ;;  %v204_v21 = vrot.slane %v195_v63, %v4184_v45  ;;  %v3540_v8 = vld [vmem:[%s4400_s12 + $0x30] ss:$8 sps:$4 sm:$0xff]   ;;  %v3545_v53 = vld [vmem:[%s4400_s12 + $0x44] ss:$8 sps:$4 sm:$0xff]  }
 0x134   :  { %v3656_v36 = vpop.eup %3655  ;;  %v1731_v56 = vand.u32 3, %v1730_v54  ;;  %vm1632_vm9 = vcmp.eq.s32.totalorder %v1627_v55, 2  ;;  %vm1629_vm11 = vcmp.eq.s32.totalorder %v1627_v55, 0  ;;  %vm1628_vm13 = vcmp.lt.s32.totalorder %v1627_v55, 2  ;;  %v3548_v54 = vld [vmem:[%s4400_s12 + $0x54] ss:$8 sps:$4 sm:$0xff]  }
 0x135   :  { %v3658_v40 = vpop.eup %3657  ;;  %v2018_v46 = vxor.u32 2147483648, %v3656_v36  ;;  %v3546_v48 = vld [vmem:[%s4400_s12 + $0x50] ss:$8 sps:$4 sm:$0xff]   ;;  %v3551_v42 = vld [vmem:[%s4400_s12 + $0x64] ss:$8 sps:$4 sm:$0xff]  }
 0x136   :  { %v2015_v10 = vxor.u32 2147483648, %v3658_v40  ;;  %vm1736_vm10 = vcmp.eq.s32.totalorder %v1731_v56, 2  ;;  %vm1733_vm12 = vcmp.eq.s32.totalorder %v1731_v56, 0  ;;  %vm1732_vm14 = vcmp.lt.s32.totalorder %v1731_v56, 2  ;;  %v3549_v55 = vld [vmem:[%s4400_s12 + $0x60] ss:$8 sps:$4 sm:$0xff]  }
 0x137   :  { %v2123_v47 = vsel %vm2121_vm2, %v2018_v46, %v3658_v40  ;;  %v2019_v49 = vsel %vm2017_vm1, %v2018_v46, %v3658_v40  ;;  %v3530_v40 = vld [vmem:[#allocation5 + $0x38] sm:$0xff]   ;;  %v3533_v46 = vld [vmem:[%s4400_s12 + $0x4] ss:$8 sps:$4 sm:$0xff]   ;;  %vm3754_vm1 = vmmov 0   ;;  %vm2891_vm2 = vcmask 64512  }
 0x138   :  { %v2120_v7 = vsel %vm2118_vm3, %v3656_v36, %v2015_v10  ;;  %v2016_v16 = vsel %vm2014_vm0, %v3656_v36, %v2015_v10  ;;  %vm1361_vm0 = vcmask 523264   ;;  %v3529_v36 = vld [vmem:[#allocation5 + $0x30] sm:$0xff]  }
 0x139   :  { %v2124_v41 = vsel %vm2117_vm5, %v2120_v7, %v2123_v47  ;;  %v2020_v14 = vsel %vm2013_vm4, %v2016_v16, %v2019_v49  ;;  %v3554_v56 = vld [vmem:[%s4400_s12 + $0x74] ss:$8 sps:$4 sm:$0xff]   ;;  %v3570_v63 = vld [vmem:[%s4400_s12 + $0xd0] ss:$8 sps:$4 sm:$0xff]  }
 0x13a   :  { %v2125_v58 = vsel %vm2011_vm6, nan, %v2124_v41  ;;  %v2021_v38 = vsel %vm2011_vm6, nan, %v2020_v14  ;;  %v3531_v41 = vld [vmem:[%s4400_s12] ss:$8 sps:$4 sm:$0xff]  }
 0x13b   :  { %2127 = vrot.lane.b32.xlu0 %v2125_v58, %s4408_s4  ;;  %v3539_v58 = vld [vmem:[%s4400_s12 + $0x24] ss:$8 sps:$4 sm:$0xff]  }
 0x13c   :  { %v3660_v57 = vpop.eup %3659 }
 0x13d   :  { %v3662_v60 = vpop.eup %3661  ;;  %v1633_v2 = vxor.u32 2147483648, %v3660_v57 }
 0x13e   :  { %v1630_v25 = vxor.u32 2147483648, %v3662_v60 }
 0x13f   :  { %v1634_v26 = vsel %vm1632_vm9, %v1633_v2, %v3662_v60  ;;  %v1738_v3 = vsel %vm1736_vm10, %v1633_v2, %v3662_v60  ;;  %v3557_v2 = vld [vmem:[%s4400_s12 + $0x84] ss:$8 sps:$4 sm:$0xff]  }
 0x140   :  { %v1631_v4 = vsel %vm1629_vm11, %v3660_v57, %v1630_v25  ;;  %v1735_v5 = vsel %vm1733_vm12, %v3660_v57, %v1630_v25  ;;  %v3552_v57 = vld [vmem:[%s4400_s12 + $0x70] ss:$8 sps:$4 sm:$0xff]  }
 0x141   :  { %v1635_v6 = vsel %vm1628_vm13, %v1631_v4, %v1634_v26  ;;  %v1739_v9 = vsel %vm1732_vm14, %v1735_v5, %v1738_v3  ;;  %v3555_v26 = vld [vmem:[%s4400_s12 + $0x80] ss:$8 sps:$4 sm:$0xff]   ;;  %v3560_v4 = vld [vmem:[%s4400_s12 + $0x94] ss:$8 sps:$4 sm:$0xff]   ;;  %v3558_v5 = vld [vmem:[%s4400_s12 + $0x90] ss:$8 sps:$4 sm:$0xff]  }
 0x142   :  { %v4173_v37 = vsel %vm1626_vm15, nan, %v1635_v6  ;;  %v1740_v12 = vsel %vm1626_vm15, nan, %v1739_v9  ;;  %v3561_v6 = vld [vmem:[%s4400_s12 + $0xa0] ss:$8 sps:$4 sm:$0xff]   ;;  %v3566_v9 = vld [vmem:[%s4400_s12 + $0xb4] ss:$8 sps:$4 sm:$0xff]  }
 0x143   :  { %1742 = vrot.lane.b32.xlu1 %v1740_v12, %s4408_s4  ;;  %v3564_v12 = vld [vmem:[%s4400_s12 + $0xb0] ss:$8 sps:$4 sm:$0xff]  }
 0x1a2   :  { %v1359_v60 = vpop.permute.xlu1 %1358 }
 0x1a3   :  { %v1362_v25 = vsel %vm1361_vm0, %v4150_v29, %v1359_v60  ;;  %v3563_v29 = vld [vmem:[%s4400_s12 + $0xa4] ss:$8 sps:$4 sm:$0xff]   ;;  %v3625_v60 = vld [vmem:[#allocation7 + $0xd8] sm:$0xff]  }
 0x1a4   :  { %v1363_v3 = vpack.c.bf16 %v1362_v25, %v1362_v25  ;;  %v3627_v25 = vld [vmem:[#allocation7 + $0xe0] sm:$0xff]  }
 0x1ad   :  { %v2128_v11 = vpop.permute.xlu0 %2127 }
 0x1ae   :  { %v4177_v13 = vsel %vm1361_vm0, %v2021_v38, %v2128_v11  ;;  %v3537_v38 = vld [vmem:[%s4400_s12 + $0x20] ss:$8 sps:$4 sm:$0xff]   ;;  %v3569_v11 = vld [vmem:[%s4400_s12 + $0xc4] ss:$8 sps:$4 sm:$0xff]  }
 0x1cd   :  { %v824_v22 = vpop.f32.mrb[0].mxu0 }
 0x1ce   :  { %v3316_v23 = vadd.f32 %v824_v22, %v200_v20  ;;  %v826_v39 = vpop.f32.mrb[1].mxu0  ;;  %v3575_v20 = vld [vmem:[%s4400_s12 + $0xe4] ss:$8 sps:$4 sm:$0xff]   ;;  %v3578_v22 = vld [vmem:[%s4400_s12 + $0xf4] ss:$8 sps:$4 sm:$0xff]  }
 0x1cf   :  { %v828_v27 = vpop.f32.mrb[2].mxu0  ;;  %v3317_v28 = vadd.f32 %v826_v39, %v204_v21  ;;  %v3573_v21 = vld [vmem:[%s4400_s12 + $0xe0] ss:$8 sps:$4 sm:$0xff]   ;;  %v3576_v39 = vld [vmem:[%s4400_s12 + $0xf0] ss:$8 sps:$4 sm:$0xff]  }
 0x1d0   :  { %v829_v61 = vpop.f32.mrb[3].mxu0  ;;  %v831_v24 = vpack.c.bf16 %v3316_v23, %v3316_v23  ;;  %v1743_v23 = vpop.permute.xlu1 %1742  ;;  %v3581_v27 = vld [vmem:[%s4400_s12 + $0x104] ss:$8 sps:$4 sm:$0xff]  }
 0x1d1   :  { %v832_v19 = vpack.c.bf16 %v3317_v28, %v3317_v28  ;;  %v1745_v28 = vsel %vm1361_vm0, %v4173_v37, %v1743_v23  ;;  %v3579_v61 = vld [vmem:[%s4400_s12 + $0x100] ss:$8 sps:$4 sm:$0xff]   ;;  %v3587_v37 = vld [vmem:[%s4400_s12 + $0x124] ss:$8 sps:$4 sm:$0xff]  }
 0x1d2   :  { %v1380_v23 = vld [vmem:[%s4401_s13] sm:$0x3] }
 0x1d3   :  { %1000 = vmatprep.mubr.bf16.mxu1 %v832_v19  ;;  %v1746_v19 = vpack.c.bf16 %v1745_v28, %v1745_v28 }
 0x1d4   :  { %1001 = vmatmul.mubr.bf16.vlgmr.msra.gmra.mrb[0].mxu1 %v831_v24  ;;  %v3582_v24 = vld [vmem:[%s4400_s12 + $0x110] ss:$8 sps:$4 sm:$0xff]  }
 0x1d5   :  { %3292 = vmatpush3.bf16.msra.mxu1 %v3523_v44  ;;  %3307 = vmatprep.mubr.msk.bf16.mxu1 %vm3754_vm1, %v3753_v59  ;;  %v3584_v44 = vld [vmem:[%s4400_s12 + $0x114] ss:$8 sps:$4 sm:$0xff]  }
 0x1d6   :  { %3293 = vmatprep.subr.bf16.mxu1 %v3753_v59 }
 0x1d9   :  { %3294 = vmatpush3.bf16.msra.mxu1 %v3524_v30  ;;  %v3585_v30 = vld [vmem:[%s4400_s12 + $0x120] ss:$8 sps:$4 sm:$0xff]  }
 0x1da   :  { %3295 = vmatprep.subr.bf16.mxu1 %v3753_v59 }
 0x1dd   :  { %3296 = vmatpush3.bf16.msra.mxu1 %v3525_v32  ;;  %v3590_v32 = vld [vmem:[%s4400_s12 + $0x134] ss:$8 sps:$4 sm:$0xff]  }
 0x1de   :  { %3297 = vmatprep.subr.bf16.mxu1 %v3753_v59 }
 0x1e1   :  { %3298 = vmatpush3.bf16.msra.mxu1 %v3526_v33  ;;  %v3593_v33 = vld [vmem:[%s4400_s12 + $0x144] ss:$8 sps:$4 sm:$0xff]  }
 0x1e2   :  { %3299 = vmatprep.subr.bf16.mxu1 %v3753_v59 }
 0x1e5   :  { %3300 = vmatpush3.bf16.msra.mxu1 %v3527_v31  ;;  %v3591_v31 = vld [vmem:[%s4400_s12 + $0x140] ss:$8 sps:$4 sm:$0xff]  }
 0x1e6   :  { %3301 = vmatprep.subr.bf16.mxu1 %v3753_v59 }
 0x1e9   :  { %3302 = vmatpush3.bf16.msra.mxu1 %v3528_v34  ;;  %v3596_v34 = vld [vmem:[%s4400_s12 + $0x154] ss:$8 sps:$4 sm:$0xff]  }
 0x1ea   :  { %3303 = vmatprep.subr.bf16.mxu1 %v3753_v59 }
 0x1ed   :  { %3304 = vmatpush3.bf16.msra.mxu1 %v3529_v36  ;;  %v3594_v36 = vld [vmem:[%s4400_s12 + $0x150] ss:$8 sps:$4 sm:$0xff]  }
 0x1ee   :  { %3305 = vmatprep.subr.bf16.mxu1 %v3753_v59 }
 0x1f1   :  { %3306 = vmatpush3.bf16.msra.mxu1 %v3530_v40  ;;  %v3599_v40 = vld [vmem:[%s4400_s12 + $0x164] ss:$8 sps:$4 sm:$0xff]  }
 0x1f2   :  { %1472 = vmatprep.subr.bf16.mxu1 %v3533_v46  ;;  %v3597_v46 = vld [vmem:[%s4400_s12 + $0x160] ss:$8 sps:$4 sm:$0xff]  }
 0x2a7   :  { %v3208_v43 = vpop.f32.mrb[0].mxu1 }
 0x2a8   :  { %v3209_v10 = vpop.f32.mrb[1].mxu1 }
 0x2a9   :  { %v3210_v47 = vadd.f32 %v3209_v10, %v3208_v43  ;;  %v3211_v49 = vpop.f32.mrb[2].mxu1  ;;  %v3602_v43 = vld [vmem:[%s4400_s12 + $0x174] ss:$8 sps:$4 sm:$0xff]   ;;  %v3603_v10 = vld [vmem:[#allocation7 + $0x40] sm:$0xff]  }
 0x2aa   :  { %v3212_v51 = vpop.f32.mrb[3].mxu1  ;;  %v2131_v49 = vpack.c.bf16 %v4177_v13, %v4177_v13  ;;  %v3614_v13 = vld [vmem:[#allocation7 + $0x28] sm:$0xff]  }
 0x2ab   :  { %v1003_v7 = vadd.f32 %v3210_v47, %v3001_v62  ;;  %v3600_v62 = vld [vmem:[%s4400_s12 + $0x170] ss:$8 sps:$4 sm:$0xff]   ;;  %v3604_v47 = vld [vmem:[#allocation7] sm:$0xff]   ;;  %v3605_v51 = vld [vmem:[#allocation7 + $0x48] sm:$0xff]  }
 0x2ad   :  { %v1008_v16 = vmax.f32 %v1003_v7, 0.0  ;;  %v3606_v7 = vld [vmem:[#allocation7 + $0x8] sm:$0xff]  }
 0x2af   :  { %v1009_v14 = vpack.c.bf16 %v1008_v16, %v1008_v16  ;;  %v3607_v16 = vld [vmem:[#allocation7 + $0x50] sm:$0xff]  }
 0x2b1   :  { %3308 = vmatmul.mubr.bf16.vlgmr.msra.gmra.mrb[4].mxu1 %v1009_v14  ;;  %v3609_v14 = vld [vmem:[#allocation7 + $0x58] sm:$0xff]  }
 0x2b2   :  { %1473 = vmatpush1.bf16.msra.mxu1 %v3531_v41  ;;  %1504 = vmatprep.mubr.bf16.mxu1 %v3746_v1  ;;  %v3608_v41 = vld [vmem:[#allocation7 + $0x10] sm:$0xff]  }
 0x2b3   :  { %1474 = vmatprep.subr.bf16.mxu1 %v3536_v50  ;;  %v3610_v50 = vld [vmem:[#allocation7 + $0x18] sm:$0xff]  }
 0x2b6   :  { %1475 = vmatpush1.bf16.msra.mxu1 %v3534_v52  ;;  %v3611_v52 = vld [vmem:[#allocation7 + $0x60] sm:$0xff]  }
 0x2b7   :  { %1476 = vmatprep.subr.bf16.mxu1 %v3539_v58  ;;  %v3612_v58 = vld [vmem:[#allocation7 + $0x20] sm:$0xff]  }
 0x2ba   :  { %1477 = vmatpush1.bf16.msra.mxu1 %v3537_v38  ;;  %v3613_v38 = vld [vmem:[#allocation7 + $0x68] sm:$0xff]  }
 0x2bb   :  { %1478 = vmatprep.subr.bf16.mxu1 %v3542_v0  ;;  %v3615_v0 = vld [vmem:[#allocation7 + $0x70] sm:$0xff]  }
 0x2be   :  { %1479 = vmatpush1.bf16.msra.mxu1 %v3540_v8  ;;  %v3616_v8 = vld [vmem:[#allocation7 + $0x30] sm:$0xff]  }
 0x2bf   :  { %1480 = vmatprep.subr.bf16.mxu1 %v3545_v53  ;;  %v3617_v53 = vld [vmem:[#allocation7 + $0x78] sm:$0xff]  }
 0x2c2   :  { %1481 = vmatpush1.bf16.msra.mxu1 %v3543_v35  ;;  %v3618_v35 = vld [vmem:[#allocation7 + $0x38] sm:$0xff]  }
 0x2c3   :  { %1482 = vmatprep.subr.bf16.mxu1 %v3548_v54  ;;  %v3619_v54 = vld [vmem:[#allocation7 + $0xc0] sm:$0xff]  }
 0x2c4   :  { %3245 = vmatprep.subr.bf16.mxu0 %v3619_v54 }
 0x2c6   :  { %1483 = vmatpush1.bf16.msra.mxu1 %v3546_v48  ;;  %v3620_v48 = vld [vmem:[#allocation7 + $0x80] sm:$0xff]  }
 0x2c7   :  { %1484 = vmatprep.subr.bf16.mxu1 %v3551_v42  ;;  %v3621_v42 = vld [vmem:[#allocation7 + $0xc8] sm:$0xff]   ;;  %3246 = vmatpush3.bf16.msra.mxu0 %v3620_v48 }
 0x2c8   :  { %3247 = vmatprep.subr.bf16.mxu0 %v3621_v42 }
 0x2ca   :  { %1485 = vmatpush1.bf16.msra.mxu1 %v3549_v55  ;;  %v3622_v55 = vld [vmem:[#allocation7 + $0x88] sm:$0xff]  }
 0x2cb   :  { %1486 = vmatprep.subr.bf16.mxu1 %v3554_v56  ;;  %v3623_v56 = vld [vmem:[#allocation7 + $0xd0] sm:$0xff]   ;;  %3248 = vmatpush3.bf16.msra.mxu0 %v3622_v55 }
 0x2cc   :  { %3249 = vmatprep.subr.bf16.mxu0 %v3623_v56  ;;  %v3126_v56 = vld [vmem:[%s4401_s13 + $0x4] sm:$0x3] }
 0x2ce   :  { %1487 = vmatpush1.bf16.msra.mxu1 %v3552_v57  ;;  %v3624_v57 = vld [vmem:[#allocation7 + $0x90] sm:$0xff]  }
 0x2cf   :  { %1857 = vmatprep.subr.bf16.mxu1 %v3557_v2  ;;  %3250 = vmatpush3.bf16.msra.mxu0 %v3624_v57  ;;  %v3626_v2 = vld [vmem:[#allocation7 + $0x98] sm:$0xff]   ;;  %v2155_v57 = vrot.slane %v3126_v56, %v4179_v18 }
 0x2d0   :  { %3251 = vmatprep.subr.bf16.mxu0 %v3625_v60  ;;  %v2159_v60 = vrot.slane %v3126_v56, %v4184_v45 }
 0x2d1   :  { %1505 = vmatmul.mubr.bf16.vlgmr.msra.gmra.mrb[8].mxu1 %v1363_v3  ;;  %v3629_v3 = vld [vmem:[#allocation7 + $0xe8] sm:$0xff]  }
 0x2d2   :  { %1858 = vmatpush1.bf16.msra.mxu1 %v3555_v26  ;;  %1889 = vmatprep.mubr.bf16.mxu1 %v3746_v1  ;;  %v3628_v26 = vld [vmem:[#allocation7 + $0xa0] sm:$0xff]  }
 0x2d3   :  { %1859 = vmatprep.subr.bf16.mxu1 %v3560_v4  ;;  %3252 = vmatpush3.bf16.msra.mxu0 %v3626_v2  ;;  %v3630_v4 = vld [vmem:[#allocation7 + $0xa8] sm:$0xff]  }
 0x2d4   :  { %3253 = vmatprep.subr.bf16.mxu0 %v3627_v25 }
 0x2d6   :  { %1860 = vmatpush1.bf16.msra.mxu1 %v3558_v5  ;;  %v3631_v5 = vld [vmem:[#allocation7 + $0xf0] sm:$0xff]  }
 0x2d7   :  { %1861 = vmatprep.subr.bf16.mxu1 %v3563_v29  ;;  %3254 = vmatpush3.bf16.msra.mxu0 %v3628_v26  ;;  %v3632_v29 = vld [vmem:[#allocation7 + $0xb0] sm:$0xff]  }
 0x2d8   :  { %3255 = vmatprep.subr.bf16.mxu0 %v3629_v3 }
 0x2da   :  { %1862 = vmatpush1.bf16.msra.mxu1 %v3561_v6  ;;  %v3633_v6 = vld [vmem:[#allocation7 + $0xf8] sm:$0xff]  }
 0x2db   :  { %1863 = vmatprep.subr.bf16.mxu1 %v3566_v9  ;;  %3256 = vmatpush3.bf16.msra.mxu0 %v3630_v4  ;;  %v3634_v9 = vld [vmem:[#allocation7 + $0xb8] sm:$0xff]  }
 0x2dc   :  { %3257 = vmatprep.subr.bf16.mxu0 %v3631_v5 }
 0x2de   :  { %1864 = vmatpush1.bf16.msra.mxu1 %v3564_v12  ;;  %v3635_v12 = vld [vmem:[#allocation7 + $0x140] sm:$0xff]  }
 0x2df   :  { %1865 = vmatprep.subr.bf16.mxu1 %v3569_v11  ;;  %3258 = vmatpush3.bf16.msra.mxu0 %v3632_v29  ;;  %v3018_v11 = vld [vmem:[%s4397_s9] ss:$0 sm:$0xff] }
 0x2e0   :  { %3259 = vmatprep.subr.bf16.mxu0 %v3633_v6 }
 0x2e2   :  { %1866 = vmatpush1.bf16.msra.mxu1 %v3567_v15 }
 0x2e3   :  { %1867 = vmatprep.subr.bf16.mxu1 %v3572_v17  ;;  %3260 = vmatpush3.bf16.msra.mxu0 %v3634_v9 }
 0x2e4   :  { %3311 = vmatprep.subr.mxu0 %v3753_v59 }
 0x2e6   :  { %1868 = vmatpush1.bf16.msra.mxu1 %v3570_v63 }
 0x2e7   :  { %1869 = vmatprep.subr.bf16.mxu1 %v3575_v20 }
 0x2ea   :  { %1870 = vmatpush1.bf16.msra.mxu1 %v3573_v21 }
 0x2eb   :  { %1871 = vmatprep.subr.bf16.mxu1 %v3578_v22 }
 0x2ee   :  { %1872 = vmatpush1.bf16.msra.mxu1 %v3576_v39  ;;  %v1385_v39 = vrot.slane %v1380_v23, %v4179_v18 }
 0x2ef   :  { %2242 = vmatprep.subr.bf16.mxu1 %v3581_v27  ;;  %v1389_v27 = vrot.slane %v1380_v23, %v4184_v45 }
 0x2f1   :  { %1890 = vmatmul.mubr.bf16.vlgmr.msra.gmra.mrb[12].mxu1 %v1746_v19 }
 0x2f2   :  { %2243 = vmatpush1.bf16.msra.mxu1 %v3579_v61  ;;  %2274 = vmatprep.mubr.bf16.mxu1 %v3746_v1  ;;  %v3588_v1 = vld [vmem:[%s4400_s12 + $0x130] ss:$8 sps:$4 sm:$0xff]  }
 0x2f3   :  { %2244 = vmatprep.subr.bf16.mxu1 %v3584_v44 }
 0x2f6   :  { %2245 = vmatpush1.bf16.msra.mxu1 %v3582_v24 }
 0x2f7   :  { %2246 = vmatprep.subr.bf16.mxu1 %v3587_v37 }
 0x2fa   :  { %2247 = vmatpush1.bf16.msra.mxu1 %v3585_v30 }
 0x2fb   :  { %2248 = vmatprep.subr.bf16.mxu1 %v3590_v32 }
 0x2fe   :  { %2249 = vmatpush1.bf16.msra.mxu1 %v3588_v1 }
 0x2ff   :  { %2250 = vmatprep.subr.bf16.mxu1 %v3593_v33  ;;  %v3636_v33 = vld [vmem:[#allocation7 + $0x100] sm:$0xff]  }
 0x302   :  { %2251 = vmatpush1.bf16.msra.mxu1 %v3591_v31 }
 0x303   :  { %2252 = vmatprep.subr.bf16.mxu1 %v3596_v34  ;;  %v3637_v34 = vld [vmem:[#allocation7 + $0x148] sm:$0xff]  }
 0x306   :  { %2253 = vmatpush1.bf16.msra.mxu1 %v3594_v36  ;;  %v3638_v36 = vld [vmem:[#allocation7 + $0x108] sm:$0xff]  }
 0x307   :  { %2254 = vmatprep.subr.bf16.mxu1 %v3599_v40  ;;  %v3639_v40 = vld [vmem:[#allocation7 + $0x150] sm:$0xff]  }
 0x30a   :  { %2255 = vmatpush1.bf16.msra.mxu1 %v3597_v46  ;;  %v3640_v46 = vld [vmem:[#allocation7 + $0x110] sm:$0xff]  }
 0x30b   :  { %2256 = vmatprep.subr.bf16.mxu1 %v3602_v43  ;;  %v3641_v43 = vld [vmem:[#allocation7 + $0x158] sm:$0xff]  }
 0x30e   :  { %2257 = vmatpush1.bf16.msra.mxu1 %v3600_v62  ;;  %v3642_v62 = vld [vmem:[#allocation7 + $0x118] sm:$0xff]  }
 0x30f   :  { %3223 = vmatprep.subr.bf16.mxu1 %v3603_v10  ;;  %v3643_v10 = vld [vmem:[#allocation7 + $0x160] sm:$0xff]  }
 0x311   :  { %2275 = vmatmul.mubr.bf16.vlgmr.msra.gmra.mrb[16].mxu1 %v2131_v49  ;;  %v3645_v49 = vld [vmem:[#allocation7 + $0x168] sm:$0xff]  }
 0x312   :  { %3224 = vmatpush3.bf16.msra.mxu1 %v3604_v47  ;;  %v3644_v47 = vld [vmem:[#allocation7 + $0x120] sm:$0xff]  }
 0x313   :  { %3225 = vmatprep.subr.bf16.mxu1 %v3605_v51  ;;  %v3081_v51 = vld [vmem:[%s4401_s13 + $0x2] sm:$0x3] }
 0x316   :  { %3226 = vmatpush3.bf16.msra.mxu1 %v3606_v7  ;;  %v3646_v7 = vld [vmem:[#allocation7 + $0x128] sm:$0xff]  }
 0x317   :  { %3227 = vmatprep.subr.bf16.mxu1 %v3607_v16  ;;  %v3647_v16 = vld [vmem:[#allocation7 + $0x170] sm:$0xff]  }
 0x31a   :  { %3228 = vmatpush3.bf16.msra.mxu1 %v3608_v41  ;;  %v1770_v41 = vrot.slane %v3081_v51, %v4179_v18  ;;  %v3143_v18 = vld [vmem:[%s4403_s15] ss:$0 sm:$0xff] }
 0x31b   :  { %3229 = vmatprep.subr.bf16.mxu1 %v3609_v14  ;;  %v1774_v14 = vrot.slane %v3081_v51, %v4184_v45 }
 0x31e   :  { %3230 = vmatpush3.bf16.msra.mxu1 %v3610_v50  ;;  %v3648_v50 = vld [vmem:[#allocation7 + $0x130] sm:$0xff]  }
 0x31f   :  { %3231 = vmatprep.subr.bf16.mxu1 %v3611_v52  ;;  %v3649_v52 = vld [vmem:[#allocation7 + $0x178] sm:$0xff]  }
 0x322   :  { %3232 = vmatpush3.bf16.msra.mxu1 %v3612_v58 }
 0x323   :  { %3233 = vmatprep.subr.bf16.mxu1 %v3613_v38 }
 0x326   :  { %3234 = vmatpush3.bf16.msra.mxu1 %v3614_v13 }
 0x327   :  { %3235 = vmatprep.subr.bf16.mxu1 %v3615_v0 }
 0x32a   :  { %3236 = vmatpush3.bf16.msra.mxu1 %v3616_v8 }
 0x32b   :  { %3237 = vmatprep.subr.bf16.mxu1 %v3617_v53  ;;  %v3650_v53 = vld [vmem:[#allocation7 + $0x138] sm:$0xff]  }
 0x32e   :  { %3238 = vmatpush3.bf16.msra.mxu1 %v3618_v35 }
 0x32f   :  { %3267 = vmatprep.subr.bf16.mxu1 %v3635_v12 }
 0x384   :  { %v1115_v15 = vpop.f32.mrb[4].mxu1 }
 0x385   :  { %v4357_v17 = vadd.f32 %v3018_v11, %v1115_v15  ;;  %v3309_v63 = vpop.f32.mrb[5].mxu1 }
 0x386   :  { %v1118_v20 = vpop.f32.mrb[6].mxu1 }
 0x387   :  { %v3310_v21 = vpop.f32.mrb[7].mxu1  ;;  %v2802_v22 = vmul.f32 %v4357_v17, %v4357_v17 }
 0x389   :  { %2803 = vadd.xlane.f32.xlu0 %v2802_v22 }
 0x3a4   :  { %v1506_v28 = vpop.f32.mrb[8].mxu1 }
 0x3a5   :  { %v1507_v61 = vadd.f32 %v1506_v28, %v1385_v39  ;;  %v1508_v19 = vpop.f32.mrb[9].mxu1 }
 0x3a6   :  { %v1509_v44 = vadd.f32 %v1508_v19, %v1389_v27  ;;  %v1510_v24 = vpop.f32.mrb[10].mxu1 }
 0x3a7   :  { %v1513_v37 = vmax.f32 %v1507_v61, 0.0  ;;  %v1511_v30 = vpop.f32.mrb[11].mxu1 }
 0x3a8   :  { %v1514_v32 = vmax.f32 %v1509_v44, 0.0 }
 0x3a9   :  { %v2285_v31 = vpack.c.bf16 %v1513_v37, %v1513_v37 }
 0x3aa   :  { %v2286_v1 = vpack.c.bf16 %v1514_v32, %v1514_v32 }
 0x3ac   :  { %2714 = vmatprep.mubr.bf16.mxu1 %v2286_v1  ;;  %v2815_v1 = vstv %s4409_s10 }
 0x3ad   :  { %2715 = vmatmul.mubr.bf16.vlgmr.msra.gmra.mrb[20].mxu1 %v2285_v31 }
 0x3ae   :  { %3268 = vmatpush3.bf16.msra.mxu1 %v3636_v33  ;;  %v2816_v33 = vmul.f32 1.442695, %v2815_v1 }
 0x3af   :  { %3269 = vmatprep.subr.bf16.mxu1 %v3637_v34 }
 0x3b0   :  { %3663 = vpow2.f32 %v2816_v33 }
 0x3b2   :  { %3270 = vmatpush3.bf16.msra.mxu1 %v3638_v36 }
 0x3b3   :  { %3271 = vmatprep.subr.bf16.mxu1 %v3639_v40 }
 0x3b6   :  { %3272 = vmatpush3.bf16.msra.mxu1 %v3640_v46 }
 0x3b7   :  { %3273 = vmatprep.subr.bf16.mxu1 %v3641_v43 }
 0x3ba   :  { %3274 = vmatpush3.bf16.msra.mxu1 %v3642_v62  ;;  %v3664_v31 = vpop.eup %3663 }
 0x3bb   :  { %3275 = vmatprep.subr.bf16.mxu1 %v3643_v10  ;;  %3338 = vpush %v3664_v31 }
 0x3be   :  { %3276 = vmatpush3.bf16.msra.mxu1 %v3644_v47 }
 0x3bf   :  { %3277 = vmatprep.subr.bf16.mxu1 %v3645_v49 }
 0x3c2   :  { %3278 = vmatpush3.bf16.msra.mxu1 %v3646_v7 }
 0x3c3   :  { %3279 = vmatprep.subr.bf16.mxu1 %v3647_v16 }
 0x3c4   :  { %v1891_v58 = vpop.f32.mrb[12].mxu1 }
 0x3c5   :  { %v1892_v38 = vadd.f32 %v1891_v58, %v1770_v41  ;;  %v1893_v13 = vpop.f32.mrb[13].mxu1 }
 0x3c6   :  { %v1894_v0 = vadd.f32 %v1893_v13, %v1774_v14  ;;  %v1895_v8 = vpop.f32.mrb[14].mxu1  ;;  %3280 = vmatpush3.bf16.msra.mxu1 %v3648_v50 }
 0x3c7   :  { %v1898_v35 = vmax.f32 %v1892_v38, 0.0  ;;  %v1896_v54 = vpop.f32.mrb[15].mxu1  ;;  %3281 = vmatprep.subr.bf16.mxu1 %v3649_v52 }
 0x3c8   :  { %v1899_v48 = vmax.f32 %v1894_v0, 0.0 }
 0x3c9   :  { %v2287_v55 = vpack.c.bf16 %v1898_v35, %v1898_v35 }
 0x3ca   :  { %v2288_v42 = vpack.c.bf16 %v1899_v48, %v1899_v48  ;;  %3282 = vmatpush3.bf16.msra.mxu1 %v3650_v53 }
 0x3cc   :  { %2754 = vmatprep.mubr.bf16.mxu0 %v2288_v42 }
 0x3cd   :  { %2755 = vmatmul.mubr.bf16.vlgmr.msra.gmra.mrb[4].mxu0 %v2287_v55 }
 0x3ce   :  { %3313 = vmatprep.mubr.msk.f32.mxu0 %vm3754_vm1, %v3753_v59 }
 0x3e4   :  { %v2276_v2 = vpop.f32.mrb[16].mxu1 }
 0x3e5   :  { %v2277_v25 = vadd.f32 %v2276_v2, %v2155_v57  ;;  %v2278_v26 = vpop.f32.mrb[17].mxu1 }
 0x3e6   :  { %v2279_v3 = vadd.f32 %v2278_v26, %v2159_v60  ;;  %v2280_v4 = vpop.f32.mrb[18].mxu1 }
 0x3e7   :  { %v2283_v5 = vmax.f32 %v2277_v25, 0.0  ;;  %v2281_v29 = vpop.f32.mrb[19].mxu1 }
 0x3e8   :  { %v2284_v6 = vmax.f32 %v2279_v3, 0.0 }
 0x3e9   :  { %v2289_v12 = vpack.c.bf16 %v2283_v5, %v2283_v5 }
 0x3ea   :  { %v2290_v9 = vpack.c.bf16 %v2284_v6, %v2284_v6 }
 0x3ec   :  { %2794 = vmatprep.mubr.bf16.mxu1 %v2290_v9  ;;  %s3339_s15 = spop %3338 }
 0x3ed   :  { %2795 = vmatmul.mubr.bf16.vlgmr.msra.gmra.mrb[24].mxu1 %v2289_v12  ;;  %v2889_v49 = vstv %s3339_s15 }
 0x416   :  { %v2804_v34 = vpop.xlane.xlu0 %2803 }
 0x417   :  { %v2805_v36 = vmax.f32 %v2804_v34, 1e-24 }
 0x480   :  { %v3239_v59 = vpop.f32.mrb[20].mxu1 }
 0x481   :  { %v3240_v11 = vpop.f32.mrb[21].mxu1 }
 0x482   :  { %v3241_v15 = vadd.f32 %v3240_v11, %v3239_v59  ;;  %v3242_v63 = vpop.f32.mrb[22].mxu1 }
 0x483   :  { %v3243_v20 = vpop.f32.mrb[23].mxu1 }
 0x484   :  { %v2717_v22 = vadd.f32 %v3241_v15, %v3143_v18 }
 0x4a0   :  { %v3261_v45 = vpop.f32.mrb[4].mxu0 }
 0x4a1   :  { %v3262_v21 = vpop.f32.mrb[5].mxu0 }
 0x4a2   :  { %v3263_v23 = vadd.f32 %v3262_v21, %v3261_v45  ;;  %v3264_v39 = vpop.f32.mrb[6].mxu0 }
 0x4a3   :  { %v3265_v27 = vpop.f32.mrb[7].mxu0 }
 0x4a4   :  { %v2757_v28 = vadd.f32 %v3263_v23, %v2717_v22 }
 0x4c0   :  { %v3283_v61 = vpop.f32.mrb[24].mxu1 }
 0x4c1   :  { %v3284_v19 = vpop.f32.mrb[25].mxu1 }
 0x4c2   :  { %v3285_v44 = vadd.f32 %v3284_v19, %v3283_v61  ;;  %v3286_v24 = vpop.f32.mrb[26].mxu1 }
 0x4c3   :  { %v3287_v37 = vpop.f32.mrb[27].mxu1 }
 0x4c4   :  { %v2797_v30 = vadd.f32 %v3285_v44, %v2757_v28 }
 0x4c6   :  { %v2808_v32 = vmul.f32 %v2797_v30, %v2797_v30 }
 0x4c8   :  { %2809 = vadd.xlane.f32.xlu1 %v2808_v32 }
 0x555   :  { %v2810_v40 = vpop.xlane.xlu1 %2809 }
 0x556   :  { %v2811_v46 = vmax.f32 %v2810_v40, 1e-24 }
 0x558   :  { %3665 = vrsqrt.f32 %v2811_v46 }
 0x559   :  { %3667 = vrsqrt.f32 %v2805_v36 }
 0x562   :  { %v3666_v43 = vpop.eup %3665 }
 0x563   :  { %v3668_v62 = vpop.eup %3667  ;;  %v2813_v10 = vmul.f32 %v3666_v43, %v2797_v30 }
 0x564   :  { %v2807_v47 = vmul.f32 %v3668_v62, %v4357_v17 }
 0x565   :  { %3312 = vmatpush3.xpose.msra.mxu0 %v2813_v10 }
 0x568   :  { %3314 = vmatmul.mubr.f32.vlgmr.msra.gmra.mrb[8].mxu0 %v2807_v47 }
 0x63b   :  { %v2885_v51 = vpop.f32.mrb[8].mxu0 }
 0x63c   :  { %v2890_v7 = vmul.f32 %v2889_v49, %v2885_v51  ;;  %v3315_v16 = vpop.f32.mrb[9].mxu0 }
 0x63e   :  { %2892 = vst.msk [vmem:[%s4404_s16] sm:$0xff] %vm2891_vm2, %v2890_v7 }
 0x63f   :  { %2897 = vsyncpa [#allocation4], 1 }
 0x640   :  { %2898 = vsyncpa [#allocation6], 1 }

</bundles_post_ra>
